<compile_context>
chip_gen: v7x
topology: tpu7x:2x2x1
jax: 0.10.0
libtpu: 0.0.40
codegen_flags: <defaults>
</compile_context>

<pallas_src>
import functools

import jax
import jax.numpy as jnp
from jax.experimental import pallas as pl
from jax.experimental.pallas import tpu as pltpu


# 32 MiB is <= the default scoped VMEM on v6e/v7x and well under physical VMEM on
# every generation (128/128/64 MiB), while raising v5e's 16 MiB default.
_VMEM_LIMIT = 32 * 1024 * 1024


# --------------------------------------------------------------------------- #
# Helpers
# --------------------------------------------------------------------------- #
def _pick_tile(dim, target, quantum):
    """Largest tile <= target that evenly divides `dim`.

    If the tile is smaller than the full dim it stays a multiple of `quantum`
    (8 for sublanes, 128 for lanes) so the BlockSpec satisfies the (8, 128)
    constraint; otherwise the full dim is used (always legal)."""
    if dim <= target:
        return dim
    t = (target // quantum) * quantum
    while t >= quantum:
        if dim % t == 0:
            return t
        t -= quantum
    return dim


def _as_row(v):
    return v.reshape(1, -1)


def _ln_rows(x, g, b, eps):
    """Row-wise LayerNorm of a 2-D f32 value; g/b are (1, C)."""
    mean = jnp.mean(x, axis=-1, keepdims=True)
    xc = x - mean
    var = jnp.mean(xc * xc, axis=-1, keepdims=True)
    return xc * jax.lax.rsqrt(var + eps) * g + b


# --------------------------------------------------------------------------- #
# Fused attention block: LN1t + LN1s + QKV proj + MHA + proj + residual
# --------------------------------------------------------------------------- #
def _attn_block_kernel(xt_ref, xs_ref,
                       g1t_ref, b1t_ref, g1s_ref, b1s_ref,
                       wq_ref, bq_ref, wk_ref, bk_ref, wv_ref, bv_ref,
                       wp_ref, bp_ref,
                       o_ref, *, num_heads, eps):
    xt = xt_ref[0].astype(jnp.float32)                       # (N, C)
    xs = xs_ref[0].astype(jnp.float32)

    # LayerNorm prologues (no HBM round-trip for nxt / nxs).
    nxt = _ln_rows(xt, g1t_ref[...].astype(jnp.float32),
                   b1t_ref[...].astype(jnp.float32), eps)
    nxs = _ln_rows(xs, g1s_ref[...].astype(jnp.float32),
                   b1s_ref[...].astype(jnp.float32), eps)

    q = jnp.dot(nxs, wq_ref[...], preferred_element_type=jnp.float32) \
        + bq_ref[...].astype(jnp.float32)
    k = jnp.dot(nxt, wk_ref[...], preferred_element_type=jnp.float32) \
        + bk_ref[...].astype(jnp.float32)
    v = jnp.dot(nxt, wv_ref[...], preferred_element_type=jnp.float32) \
        + bv_ref[...].astype(jnp.float32)

    n, c = q.shape
    dh = c // num_heads
    scale = float(dh) ** -0.5

    # Head split / merge entirely in VMEM via static lane slices + concat.
    head_outs = []
    for h in range(num_heads):
        lo, hi = h * dh, (h + 1) * dh
        qh, kh, vh = q[:, lo:hi], k[:, lo:hi], v[:, lo:hi]          # (N, dh)
        s = jax.lax.dot_general(qh, kh, (((1,), (1,)), ((), ())),   # q @ k^T
                                preferred_element_type=jnp.float32) * scale
        s = s - jnp.max(s, axis=-1, keepdims=True)
        p = jnp.exp(s)
        inv = pl.reciprocal(jnp.sum(p, axis=-1, keepdims=True), approx=False)
        p = p * inv
        head_outs.append(jnp.dot(p, vh, preferred_element_type=jnp.float32))
    attn = jnp.concatenate(head_outs, axis=-1)                       # (N, C)

    # Output projection + residual (residual is the *normed* xs).
    xst = nxs + jnp.dot(attn, wp_ref[...], preferred_element_type=jnp.float32) \
        + bp_ref[...].astype(jnp.float32)
    o_ref[0] = xst.astype(o_ref.dtype)


def attention_block(xt, xs, p, *, num_heads, eps=1e-6):
    """xst = nxs + proj(MHA(q(nxs), k(nxt), v(nxt))) in a single pallas_call."""
    B, N, C = xt.shape
    dh = C // num_heads

    x_spec = pl.BlockSpec((1, N, C), lambda b: (b, 0, 0))
    vec_spec = pl.BlockSpec((1, C), lambda b: (0, 0))
    mat_spec = pl.BlockSpec((C, C), lambda b: (0, 0))

    flops = 8 * B * N * C * C + 4 * B * N * N * C
    bytes_accessed = 4 * (3 * B * N * C + 4 * C * C + 6 * C)

    return pl.pallas_call(
        functools.partial(_attn_block_kernel, num_heads=num_heads, eps=eps),
        out_shape=jax.ShapeDtypeStruct((B, N, C), xt.dtype),
        grid=(B,),
        in_specs=[x_spec, x_spec,
                  vec_spec, vec_spec, vec_spec, vec_spec,
                  mat_spec, vec_spec, mat_spec, vec_spec, mat_spec, vec_spec,
                  mat_spec, vec_spec],
        out_specs=x_spec,
        compiler_params=pltpu.CompilerParams(
            dimension_semantics=("parallel",),
            vmem_limit_bytes=_VMEM_LIMIT),
        cost_estimate=pl.CostEstimate(
            flops=flops,
            transcendentals=B * num_heads * N * N,
            bytes_accessed=bytes_accessed),
    )(xt, xs,
      _as_row(p["norm1t_g"]), _as_row(p["norm1t_b"]),
      _as_row(p["norm1s_g"]), _as_row(p["norm1s_b"]),
      p["q_w"], _as_row(p["q_b"]),
      p["k_w"], _as_row(p["k_b"]),
      p["v_w"], _as_row(p["v_b"]),
      p["proj_w"], _as_row(p["proj_b"]))


# --------------------------------------------------------------------------- #
# Fused MLP block: LN2 + fc1 + GELU + fc2 + residual
# (hidden dim = reduction grid axis; hidden activation never written to HBM)
# --------------------------------------------------------------------------- #
def _mlp_block_kernel(x_ref, xres_ref, g2_ref, b2_ref,
                      w1_ref, b1_ref, w2_ref, bias2_ref,
                      o_ref, nx_ref, acc_ref, *, eps):
    k = pl.program_id(2)

    @pl.when(k == 0)
    def _():
        x = x_ref[...].astype(jnp.float32)
        nx_ref[...] = _ln_rows(x, g2_ref[...].astype(jnp.float32),
                               b2_ref[...].astype(jnp.float32), eps)
        acc_ref[...] = jnp.zeros_like(acc_ref)

    # fc1 slice for this hidden tile (contraction over C is complete), GELU,
    # then accumulate the fc2 partial product over the hidden reduction axis.
    h = jnp.dot(nx_ref[...], w1_ref[...], preferred_element_type=jnp.float32)
    h = jax.nn.gelu(h + b1_ref[...].astype(jnp.float32), approximate=True)
    acc_ref[...] += jnp.dot(h, w2_ref[...], preferred_element_type=jnp.float32)

    @pl.when(k == pl.num_programs(2) - 1)
    def _():
        o_ref[...] = (acc_ref[...]
                      + bias2_ref[...].astype(jnp.float32)
                      + xres_ref[...].astype(jnp.float32)).astype(o_ref.dtype)


def mlp_block(x2d, p, *, eps=1e-6, tm_target=512, tn_target=512, tk_target=512):
    """out = x2d + fc2(GELU(fc1(LayerNorm2(x2d)))) in a single pallas_call."""
    M, C = x2d.shape
    Hd = p["fc1_w"].shape[1]
    tm = _pick_tile(M, tm_target, 8)
    tn = _pick_tile(C, tn_target, 128)
    tk = _pick_tile(Hd, tk_target, 128)
    grid = (M // tm, C // tn, Hd // tk)

    return pl.pallas_call(
        functools.partial(_mlp_block_kernel, eps=eps),
        out_shape=jax.ShapeDtypeStruct((M, C), x2d.dtype),
        grid=grid,
        in_specs=[
            pl.BlockSpec((tm, C), lambda i, j, k: (i, 0)),     # x (full row, for LN)
            pl.BlockSpec((tm, tn), lambda i, j, k: (i, j)),    # x residual slab
            pl.BlockSpec((1, C), lambda i, j, k: (0, 0)),      # norm2 gamma
            pl.BlockSpec((1, C), lambda i, j, k: (0, 0)),      # norm2 beta
            pl.BlockSpec((C, tk), lambda i, j, k: (0, k)),     # fc1 weight
            pl.BlockSpec((1, tk), lambda i, j, k: (0, k)),     # fc1 bias
            pl.BlockSpec((tk, tn), lambda i, j, k: (k, j)),    # fc2 weight
            pl.BlockSpec((1, tn), lambda i, j, k: (0, j)),     # fc2 bias
        ],
        out_specs=pl.BlockSpec((tm, tn), lambda i, j, k: (i, j)),
        scratch_shapes=[pltpu.VMEM((tm, C), jnp.float32),      # LN2(x) cache
                        pltpu.VMEM((tm, tn), jnp.float32)],    # fc2 accumulator
        compiler_params=pltpu.CompilerParams(
            dimension_semantics=("parallel", "parallel", "arbitrary"),
            vmem_limit_bytes=_VMEM_LIMIT),
        cost_estimate=pl.CostEstimate(
            flops=4 * M * C * Hd,
            transcendentals=M * Hd,
            bytes_accessed=4 * (3 * M * C + 2 * C * Hd + Hd + C)),
    )(x2d, x2d, _as_row(p["norm2_g"]), _as_row(p["norm2_b"]),
      p["fc1_w"], _as_row(p["fc1_b"]), p["fc2_w"], _as_row(p["fc2_b"]))


# --------------------------------------------------------------------------- #
# Standalone LayerNorm (final norm only)
# --------------------------------------------------------------------------- #
def _ln_kernel(x_ref, g_ref, b_ref, o_ref, *, eps):
    x = x_ref[...].astype(jnp.float32)
    y = _ln_rows(x, g_ref[...].astype(jnp.float32),
                 b_ref[...].astype(jnp.float32), eps)
    o_ref[...] = y.astype(o_ref.dtype)


def layer_norm(x2d, gamma, beta, *, eps=1e-6, tm_target=1024):
    M, C = x2d.shape
    tm = _pick_tile(M, tm_target, 8)
    return pl.pallas_call(
        functools.partial(_ln_kernel, eps=eps),
        out_shape=jax.ShapeDtypeStruct((M, C), x2d.dtype),
        grid=(M // tm,),
        in_specs=[pl.BlockSpec((tm, C), lambda i: (i, 0)),
                  pl.BlockSpec((1, C), lambda i: (0, 0)),
                  pl.BlockSpec((1, C), lambda i: (0, 0))],
        out_specs=pl.BlockSpec((tm, C), lambda i: (i, 0)),
        compiler_params=pltpu.CompilerParams(dimension_semantics=("parallel",)),
    )(x2d, _as_row(gamma), _as_row(beta))


# --------------------------------------------------------------------------- #
# BlockTime / TemporalEncoder forward
# --------------------------------------------------------------------------- #
def block_time_forward(xt, xs, p, *, num_heads):
    """One BlockTime layer. xt, xs: (B, N, C). Returns the new xt (= xst)."""
    B, N, C = xt.shape
    xst = attention_block(xt, xs, p, num_heads=num_heads)        # (B, N, C)
    out = mlp_block(xst.reshape(B * N, C), p)                    # (B*N, C)
    return out.reshape(B, N, C)


def temporal_encoder_forward(xt, xs, params, *, num_heads=8):
    """TemporalEncoder.forward: 6 BlockTime layers + final LayerNorm."""
    for p in params["blocks"]:
        xt = block_time_forward(xt, xs, p, num_heads=num_heads)
    B, N, C = xt.shape
    out = layer_norm(xt.reshape(B * N, C), params["norm_g"], params["norm_b"])
    return out.reshape(B, N, C)


# --------------------------------------------------------------------------- #
# Deterministic parameter init (weights stored as (in, out))
# --------------------------------------------------------------------------- #
def init_params(key, *, dim, depth=6, mlp_ratio=4.0):
    hidden = int(dim * mlp_ratio)

    def lin(k, fan_in, fan_out):
        kw, kb = jax.random.split(k)
        w = jax.random.normal(kw, (fan_in, fan_out), jnp.float32) * 0.02
        b = jax.random.normal(kb, (fan_out,), jnp.float32) * 0.02
        return w, b

    def ln(k):
        kg, kb = jax.random.split(k)
        g = 1.0 + 0.02 * jax.random.normal(kg, (dim,), jnp.float32)
        b = 0.02 * jax.random.normal(kb, (dim,), jnp.float32)
        return g, b

    keys = jax.random.split(key, depth + 1)
    blocks = []
    for i in range(depth):
        ks = jax.random.split(keys[i], 9)
        n1t_g, n1t_b = ln(ks[0])
        n1s_g, n1s_b = ln(ks[1])
        n2_g, n2_b = ln(ks[2])
        q_w, q_b = lin(ks[3], dim, dim)
        k_w, k_b = lin(ks[4], dim, dim)
        v_w, v_b = lin(ks[5], dim, dim)
        pj_w, pj_b = lin(ks[6], dim, dim)
        f1_w, f1_b = lin(ks[7], dim, hidden)
        f2_w, f2_b = lin(ks[8], hidden, dim)
        blocks.append(dict(
            norm1t_g=n1t_g, norm1t_b=n1t_b,
            norm1s_g=n1s_g, norm1s_b=n1s_b,
            q_w=q_w, q_b=q_b, k_w=k_w, k_b=k_b, v_w=v_w, v_b=v_b,
            proj_w=pj_w, proj_b=pj_b,
            norm2_g=n2_g, norm2_b=n2_b,
            fc1_w=f1_w, fc1_b=f1_b,
            fc2_w=f2_w, fc2_b=f2_b,
        ))
    ng, nb = ln(keys[depth])
    return dict(blocks=blocks, norm_g=ng, norm_b=nb)


# --------------------------------------------------------------------------- #
# Pure-JAX reference (same math, no Pallas) for the self-test
# --------------------------------------------------------------------------- #
def _ref_layer_norm(x, g, b, eps=1e-6):
    mean = jnp.mean(x, axis=-1, keepdims=True)
    var = jnp.mean((x - mean) ** 2, axis=-1, keepdims=True)
    return (x - mean) * jax.lax.rsqrt(var + eps) * g + b


def _ref_block(xt, xs, p, num_heads):
    B, N, C = xt.shape
    dh = C // num_heads
    nxt = _ref_layer_norm(xt, p["norm1t_g"], p["norm1t_b"])
    nxs = _ref_layer_norm(xs, p["norm1s_g"], p["norm1s_b"])
    q = nxs @ p["q_w"] + p["q_b"]
    k = nxt @ p["k_w"] + p["k_b"]
    v = nxt @ p["v_w"] + p["v_b"]

    def split(t):
        return t.reshape(B, N, num_heads, dh).transpose(0, 2, 1, 3)

    s = jnp.einsum("bhqd,bhkd->bhqk", split(q), split(k)) * (float(dh) ** -0.5)
    a = jax.nn.softmax(s, axis=-1)
    o = jnp.einsum("bhqk,bhkd->bhqd", a, split(v))
    o = o.transpose(0, 2, 1, 3).reshape(B, N, C)
    xst = nxs + (o @ p["proj_w"] + p["proj_b"])
    h = _ref_layer_norm(xst, p["norm2_g"], p["norm2_b"])
    h = jax.nn.gelu(h @ p["fc1_w"] + p["fc1_b"], approximate=True)
    return xst + (h @ p["fc2_w"] + p["fc2_b"])


def temporal_encoder_reference(xt, xs, params, *, num_heads=8):
    for p in params["blocks"]:
        xt = _ref_block(xt, xs, p, num_heads)
    return _ref_layer_norm(xt, params["norm_g"], params["norm_b"])


# --------------------------------------------------------------------------- #
if __name__ == "__main__":
    # Small shapes consistent with the module: feature_size (embed_dim) = 32,
    # num_heads = 8 (head_dim = 4), depth = 6, mlp_ratio = 4, batch = 2, seq = 8.
    B, N, C = 2, 8, 32
    NUM_HEADS = 8

    key = jax.random.PRNGKey(0)
    k_xt, k_xs, k_p = jax.random.split(key, 3)
    xt = jax.random.normal(k_xt, (B, N, C), jnp.float32)
    xs = jax.random.normal(k_xs, (B, N, C), jnp.float32)
    params = init_params(k_p, dim=C, depth=6, mlp_ratio=4.0)

    fwd = jax.jit(functools.partial(temporal_encoder_forward, num_heads=NUM_HEADS))
    out = jax.block_until_ready(fwd(xt, xs, params))

    with jax.default_matmul_precision("highest"):
        ref = temporal_encoder_reference(xt, xs, params, num_heads=NUM_HEADS)
    ref = jax.block_until_ready(ref)

    assert out.shape == (B, N, C)
    max_err = float(jnp.max(jnp.abs(out - ref)))
    assert jnp.allclose(out, ref, atol=2e-3, rtol=2e-3), f"max abs err {max_err}"
    print("KERNEL_OK")
</pallas_src>

<mosaic_0001>
module attributes {stable_mosaic.version = 11 : i64} {
  func.func @_ln_kernel(%arg0: i32, %arg1: memref<16x32xf32, #tpu.memory_space<vmem>>, %arg2: memref<1x32xf32, #tpu.memory_space<vmem>>, %arg3: memref<1x32xf32, #tpu.memory_space<vmem>>, %arg4: memref<16x32xf32, #tpu.memory_space<vmem>>) attributes {dimension_semantics = [#tpu.dimension_semantics<parallel>], iteration_bounds = array<i64: 1>, scalar_prefetch = 0 : i64, scratch_operands = 0 : i64, tpu.core_type = #tpu.core_type<tc>, window_params = [{transform_indices = @transform_0, window_bounds = array<i64: 16, 32>}, {pipeline_mode = #tpu.pipeline_mode<synchronous>, transform_indices = @transform_1, window_bounds = array<i64: 1, 32>}, {pipeline_mode = #tpu.pipeline_mode<synchronous>, transform_indices = @transform_2, window_bounds = array<i64: 1, 32>}, {transform_indices = @transform_3, window_bounds = array<i64: 16, 32>}]} {
    %c0 = arith.constant 0 : index
    %c0_0 = arith.constant 0 : index
    %0 = vector.load %arg1[%c0, %c0_0] : memref<16x32xf32, #tpu.memory_space<vmem>>, vector<16x32xf32>
    %c0_1 = arith.constant 0 : index
    %c0_2 = arith.constant 0 : index
    %1 = vector.load %arg2[%c0_1, %c0_2] : memref<1x32xf32, #tpu.memory_space<vmem>>, vector<1x32xf32>
    %c0_3 = arith.constant 0 : index
    %c0_4 = arith.constant 0 : index
    %2 = vector.load %arg3[%c0_3, %c0_4] : memref<1x32xf32, #tpu.memory_space<vmem>>, vector<1x32xf32>
    %cst = arith.constant dense<0.000000e+00> : vector<16xf32>
    %3 = vector.multi_reduction <add>, %0, %cst [1] : vector<16x32xf32> to vector<16xf32>
    %4 = vector.shape_cast %3 : vector<16xf32> to vector<16x1xf32>
    %cst_5 = arith.constant 3.200000e+01 : f32
    %5 = vector.broadcast %cst_5 : f32 to vector<16x1xf32>
    %6 = arith.divf %4, %5 : vector<16x1xf32>
    %7 = vector.broadcast %6 : vector<16x1xf32> to vector<16x32xf32>
    %8 = arith.subf %0, %7 : vector<16x32xf32>
    %9 = arith.mulf %8, %8 : vector<16x32xf32>
    %cst_6 = arith.constant dense<0.000000e+00> : vector<16xf32>
    %10 = vector.multi_reduction <add>, %9, %cst_6 [1] : vector<16x32xf32> to vector<16xf32>
    %11 = vector.shape_cast %10 : vector<16xf32> to vector<16x1xf32>
    %cst_7 = arith.constant 3.200000e+01 : f32
    %12 = vector.broadcast %cst_7 : f32 to vector<16x1xf32>
    %13 = arith.divf %11, %12 : vector<16x1xf32>
    %cst_8 = arith.constant 9.99999997E-7 : f32
    %14 = vector.broadcast %cst_8 : f32 to vector<16x1xf32>
    %15 = arith.addf %13, %14 : vector<16x1xf32>
    %16 = math.rsqrt %15 : vector<16x1xf32>
    %17 = vector.broadcast %16 : vector<16x1xf32> to vector<16x32xf32>
    %18 = arith.mulf %8, %17 : vector<16x32xf32>
    %19 = vector.broadcast %1 : vector<1x32xf32> to vector<16x32xf32>
    %20 = arith.mulf %18, %19 : vector<16x32xf32>
    %21 = vector.broadcast %2 : vector<1x32xf32> to vector<16x32xf32>
    %22 = arith.addf %20, %21 : vector<16x32xf32>
    %c0_9 = arith.constant 0 : index
    %c0_10 = arith.constant 0 : index
    %23 = vector.load %arg4[%c0_9, %c0_10] : memref<16x32xf32, #tpu.memory_space<vmem>>, vector<16x32xf32>
    tpu.vector_store %arg4[%c0_9, %c0_10], %22 {strides = array<i32>} : memref<16x32xf32, #tpu.memory_space<vmem>>, vector<16x32xf32>,
    return
  }
  func.func @transform_0(%arg0: i32) -> (i32, i32) {
    %c0_i32 = arith.constant 0 : i32
    %c0_i32_0 = arith.constant 0 : i32
    return %arg0, %c0_i32 : i32, i32
  }
  func.func @transform_1(%arg0: i32) -> (i32, i32) {
    %c0_i32 = arith.constant 0 : i32
    %c0_i32_0 = arith.constant 0 : i32
    %c0_i32_1 = arith.constant 0 : i32
    return %c0_i32, %c0_i32_0 : i32, i32
  }
  func.func @transform_2(%arg0: i32) -> (i32, i32) {
    %c0_i32 = arith.constant 0 : i32
    %c0_i32_0 = arith.constant 0 : i32
    %c0_i32_1 = arith.constant 0 : i32
    return %c0_i32, %c0_i32_0 : i32, i32
  }
  func.func @transform_3(%arg0: i32) -> (i32, i32) {
    %c0_i32 = arith.constant 0 : i32
    %c0_i32_0 = arith.constant 0 : i32
    return %arg0, %c0_i32 : i32, i32
  }
}

module attributes {stable_mosaic.version = 11 : i64} {
  func.func @_mlp_block_kernel(%arg0: i32, %arg1: i32, %arg2: i32, %arg3: memref<16x32xf32, #tpu.memory_space<vmem>>, %arg4: memref<16x32xf32, #tpu.memory_space<vmem>>, %arg5: memref<1x32xf32, #tpu.memory_space<vmem>>, %arg6: memref<1x32xf32, #tpu.memory_space<vmem>>, %arg7: memref<32x128xf32, #tpu.memory_space<vmem>>, %arg8: memref<1x128xf32, #tpu.memory_space<vmem>>, %arg9: memref<128x32xf32, #tpu.memory_space<vmem>>, %arg10: memref<1x32xf32, #tpu.memory_space<vmem>>, %arg11: memref<16x32xf32, #tpu.memory_space<vmem>>, %arg12: memref<16x32xf32, #tpu.memory_space<vmem>>, %arg13: memref<16x32xf32, #tpu.memory_space<vmem>>) attributes {dimension_semantics = [#tpu.dimension_semantics<parallel>, #tpu.dimension_semantics<parallel>, #tpu.dimension_semantics<arbitrary>], iteration_bounds = array<i64: 1, 1, 1>, scalar_prefetch = 0 : i64, scratch_operands = 2 : i64, tpu.core_type = #tpu.core_type<tc>, window_params = [{transform_indices = @transform_0, window_bounds = array<i64: 16, 32>}, {transform_indices = @transform_1, window_bounds = array<i64: 16, 32>}, {pipeline_mode = #tpu.pipeline_mode<synchronous>, transform_indices = @transform_2, window_bounds = array<i64: 1, 32>}, {pipeline_mode = #tpu.pipeline_mode<synchronous>, transform_indices = @transform_3, window_bounds = array<i64: 1, 32>}, {transform_indices = @transform_4, window_bounds = array<i64: 32, 128>}, {transform_indices = @transform_5, window_bounds = array<i64: 1, 128>}, {transform_indices = @transform_6, window_bounds = array<i64: 128, 32>}, {transform_indices = @transform_7, window_bounds = array<i64: 1, 32>}, {transform_indices = @transform_8, window_bounds = array<i64: 16, 32>}]} {
    %c0_i32 = arith.constant 0 : i32
    %0 = arith.cmpi eq, %arg2, %c0_i32 : i32
    %1 = arith.extui %0 : i1 to i32
    %c0_i32_0 = arith.constant 0 : i32
    %2 = arith.cmpi ne, %1, %c0_i32_0 : i32
    scf.if %2 {
      %c0_19 = arith.constant 0 : index
      %c0_20 = arith.constant 0 : index
      %30 = vector.load %arg3[%c0_19, %c0_20] : memref<16x32xf32, #tpu.memory_space<vmem>>, vector<16x32xf32>
      %c0_21 = arith.constant 0 : index
      %c0_22 = arith.constant 0 : index
      %31 = vector.load %arg5[%c0_21, %c0_22] : memref<1x32xf32, #tpu.memory_space<vmem>>, vector<1x32xf32>
      %c0_23 = arith.constant 0 : index
      %c0_24 = arith.constant 0 : index
      %32 = vector.load %arg6[%c0_23, %c0_24] : memref<1x32xf32, #tpu.memory_space<vmem>>, vector<1x32xf32>
      %cst_25 = arith.constant dense<0.000000e+00> : vector<16xf32>
      %33 = vector.multi_reduction <add>, %30, %cst_25 [1] : vector<16x32xf32> to vector<16xf32>
      %34 = vector.shape_cast %33 : vector<16xf32> to vector<16x1xf32>
      %cst_26 = arith.constant 3.200000e+01 : f32
      %35 = vector.broadcast %cst_26 : f32 to vector<16x1xf32>
      %36 = arith.divf %34, %35 : vector<16x1xf32>
      %37 = vector.broadcast %36 : vector<16x1xf32> to vector<16x32xf32>
      %38 = arith.subf %30, %37 : vector<16x32xf32>
      %39 = arith.mulf %38, %38 : vector<16x32xf32>
      %cst_27 = arith.constant dense<0.000000e+00> : vector<16xf32>
      %40 = vector.multi_reduction <add>, %39, %cst_27 [1] : vector<16x32xf32> to vector<16xf32>
      %41 = vector.shape_cast %40 : vector<16xf32> to vector<16x1xf32>
      %cst_28 = arith.constant 3.200000e+01 : f32
      %42 = vector.broadcast %cst_28 : f32 to vector<16x1xf32>
      %43 = arith.divf %41, %42 : vector<16x1xf32>
      %cst_29 = arith.constant 9.99999997E-7 : f32
      %44 = vector.broadcast %cst_29 : f32 to vector<16x1xf32>
      %45 = arith.addf %43, %44 : vector<16x1xf32>
      %46 = math.rsqrt %45 : vector<16x1xf32>
      %47 = vector.broadcast %46 : vector<16x1xf32> to vector<16x32xf32>
      %48 = arith.mulf %38, %47 : vector<16x32xf32>
      %49 = vector.broadcast %31 : vector<1x32xf32> to vector<16x32xf32>
      %50 = arith.mulf %48, %49 : vector<16x32xf32>
      %51 = vector.broadcast %32 : vector<1x32xf32> to vector<16x32xf32>
      %52 = arith.addf %50, %51 : vector<16x32xf32>
      %c0_30 = arith.constant 0 : index
      %c0_31 = arith.constant 0 : index
      %53 = vector.load %arg12[%c0_30, %c0_31] : memref<16x32xf32, #tpu.memory_space<vmem>>, vector<16x32xf32>
      tpu.vector_store %arg12[%c0_30, %c0_31], %52 {strides = array<i32>} : memref<16x32xf32, #tpu.memory_space<vmem>>, vector<16x32xf32>,
      %cst_32 = arith.constant 0.000000e+00 : f32
      %54 = vector.broadcast %cst_32 : f32 to vector<16x32xf32>
      %c0_33 = arith.constant 0 : index
      %c0_34 = arith.constant 0 : index
      %55 = vector.load %arg13[%c0_33, %c0_34] : memref<16x32xf32, #tpu.memory_space<vmem>>, vector<16x32xf32>
      tpu.vector_store %arg13[%c0_33, %c0_34], %54 {strides = array<i32>} : memref<16x32xf32, #tpu.memory_space<vmem>>, vector<16x32xf32>,
    } else {
    }
    %c0 = arith.constant 0 : index
    %c0_1 = arith.constant 0 : index
    %3 = vector.load %arg12[%c0, %c0_1] : memref<16x32xf32, #tpu.memory_space<vmem>>, vector<16x32xf32>
    %c0_2 = arith.constant 0 : index
    %c0_3 = arith.constant 0 : index
    %4 = vector.load %arg7[%c0_2, %c0_3] : memref<32x128xf32, #tpu.memory_space<vmem>>, vector<32x128xf32>
    %cst = arith.constant dense<0.000000e+00> : vector<16x128xf32>
    %5 = tpu.matmul %3, %4, %cst {dimension_numbers = #tpu.dot_dimension_numbers<[1], [0], [0], [1], [0, 0, 1, 1], [], []>} : vector<16x32xf32>, vector<32x128xf32>, vector<16x128xf32> -> vector<16x128xf32>
    %c0_4 = arith.constant 0 : index
    %c0_5 = arith.constant 0 : index
    %6 = vector.load %arg8[%c0_4, %c0_5] : memref<1x128xf32, #tpu.memory_space<vmem>>, vector<1x128xf32>
    %7 = vector.broadcast %6 : vector<1x128xf32> to vector<16x128xf32>
    %8 = arith.addf %5, %7 : vector<16x128xf32>
    %9 = arith.mulf %8, %8 : vector<16x128xf32>
    %10 = arith.mulf %8, %9 : vector<16x128xf32>
    %cst_6 = arith.constant 4.471500e-02 : f32
    %11 = vector.broadcast %cst_6 : f32 to vector<16x128xf32>
    %12 = arith.mulf %11, %10 : vector<16x128xf32>
    %13 = arith.addf %8, %12 : vector<16x128xf32>
    %cst_7 = arith.constant 0.797884583 : f32
    %14 = vector.broadcast %cst_7 : f32 to vector<16x128xf32>
    %15 = arith.mulf %14, %13 : vector<16x128xf32>
    %16 = math.tanh %15 : vector<16x128xf32>
    %cst_8 = arith.constant 1.000000e+00 : f32
    %17 = vector.broadcast %cst_8 : f32 to vector<16x128xf32>
    %18 = arith.addf %17, %16 : vector<16x128xf32>
    %cst_9 = arith.constant 5.000000e-01 : f32
    %19 = vector.broadcast %cst_9 : f32 to vector<16x128xf32>
    %20 = arith.mulf %19, %18 : vector<16x128xf32>
    %21 = arith.mulf %8, %20 : vector<16x128xf32>
    %c0_10 = arith.constant 0 : index
    %c0_11 = arith.constant 0 : index
    %22 = vector.load %arg13[%c0_10, %c0_11] : memref<16x32xf32, #tpu.memory_space<vmem>>, vector<16x32xf32>
    %c0_12 = arith.constant 0 : index
    %c0_13 = arith.constant 0 : index
    %23 = vector.load %arg9[%c0_12, %c0_13] : memref<128x32xf32, #tpu.memory_space<vmem>>, vector<128x32xf32>
    %cst_14 = arith.constant dense<0.000000e+00> : vector<16x32xf32>
    %24 = tpu.matmul %21, %23, %cst_14 {dimension_numbers = #tpu.dot_dimension_numbers<[1], [0], [0], [1], [0, 0, 1, 1], [], []>} : vector<16x128xf32>, vector<128x32xf32>, vector<16x32xf32> -> vector<16x32xf32>
    %25 = arith.addf %22, %24 : vector<16x32xf32>
    %c0_15 = arith.constant 0 : index
    %c0_16 = arith.constant 0 : index
    %26 = vector.load %arg13[%c0_15, %c0_16] : memref<16x32xf32, #tpu.memory_space<vmem>>, vector<16x32xf32>
    tpu.vector_store %arg13[%c0_15, %c0_16], %25 {strides = array<i32>} : memref<16x32xf32, #tpu.memory_space<vmem>>, vector<16x32xf32>,
    %c0_i32_17 = arith.constant 0 : i32
    %27 = arith.cmpi eq, %arg2, %c0_i32_17 : i32
    %28 = arith.extui %27 : i1 to i32
    %c0_i32_18 = arith.constant 0 : i32
    %29 = arith.cmpi ne, %28, %c0_i32_18 : i32
    scf.if %29 {
      %c0_19 = arith.constant 0 : index
      %c0_20 = arith.constant 0 : index
      %30 = vector.load %arg13[%c0_19, %c0_20] : memref<16x32xf32, #tpu.memory_space<vmem>>, vector<16x32xf32>
      %c0_21 = arith.constant 0 : index
      %c0_22 = arith.constant 0 : index
      %31 = vector.load %arg10[%c0_21, %c0_22] : memref<1x32xf32, #tpu.memory_space<vmem>>, vector<1x32xf32>
      %32 = vector.broadcast %31 : vector<1x32xf32> to vector<16x32xf32>
      %33 = arith.addf %30, %32 : vector<16x32xf32>
      %c0_23 = arith.constant 0 : index
      %c0_24 = arith.constant 0 : index
      %34 = vector.load %arg4[%c0_23, %c0_24] : memref<16x32xf32, #tpu.memory_space<vmem>>, vector<16x32xf32>
      %35 = arith.addf %33, %34 : vector<16x32xf32>
      %c0_25 = arith.constant 0 : index
      %c0_26 = arith.constant 0 : index
      %36 = vector.load %arg11[%c0_25, %c0_26] : memref<16x32xf32, #tpu.memory_space<vmem>>, vector<16x32xf32>
      tpu.vector_store %arg11[%c0_25, %c0_26], %35 {strides = array<i32>} : memref<16x32xf32, #tpu.memory_space<vmem>>, vector<16x32xf32>,
    } else {
    }
    return
  }
  func.func @transform_0(%arg0: i32, %arg1: i32, %arg2: i32) -> (i32, i32) {
    %c0_i32 = arith.constant 0 : i32
    %c0_i32_0 = arith.constant 0 : i32
    return %arg0, %c0_i32 : i32, i32
  }
  func.func @transform_1(%arg0: i32, %arg1: i32, %arg2: i32) -> (i32, i32) {
    %c0_i32 = arith.constant 0 : i32
    return %arg0, %arg1 : i32, i32
  }
  func.func @transform_2(%arg0: i32, %arg1: i32, %arg2: i32) -> (i32, i32) {
    %c0_i32 = arith.constant 0 : i32
    %c0_i32_0 = arith.constant 0 : i32
    %c0_i32_1 = arith.constant 0 : i32
    return %c0_i32, %c0_i32_0 : i32, i32
  }
  func.func @transform_3(%arg0: i32, %arg1: i32, %arg2: i32) -> (i32, i32) {
    %c0_i32 = arith.constant 0 : i32
    %c0_i32_0 = arith.constant 0 : i32
    %c0_i32_1 = arith.constant 0 : i32
    return %c0_i32, %c0_i32_0 : i32, i32
  }
  func.func @transform_4(%arg0: i32, %arg1: i32, %arg2: i32) -> (i32, i32) {
    %c0_i32 = arith.constant 0 : i32
    %c0_i32_0 = arith.constant 0 : i32
    return %c0_i32, %arg2 : i32, i32
  }
  func.func @transform_5(%arg0: i32, %arg1: i32, %arg2: i32) -> (i32, i32) {
    %c0_i32 = arith.constant 0 : i32
    %c0_i32_0 = arith.constant 0 : i32
    return %c0_i32, %arg2 : i32, i32
  }
  func.func @transform_6(%arg0: i32, %arg1: i32, %arg2: i32) -> (i32, i32) {
    %c0_i32 = arith.constant 0 : i32
    return %arg2, %arg1 : i32, i32
  }
  func.func @transform_7(%arg0: i32, %arg1: i32, %arg2: i32) -> (i32, i32) {
    %c0_i32 = arith.constant 0 : i32
    %c0_i32_0 = arith.constant 0 : i32
    return %c0_i32, %arg1 : i32, i32
  }
  func.func @transform_8(%arg0: i32, %arg1: i32, %arg2: i32) -> (i32, i32) {
    %c0_i32 = arith.constant 0 : i32
    return %arg0, %arg1 : i32, i32
  }
}

module attributes {stable_mosaic.version = 11 : i64} {
  func.func @_attn_block_kernel(%arg0: i32, %arg1: memref<1x8x32xf32, #tpu.memory_space<vmem>>, %arg2: memref<1x8x32xf32, #tpu.memory_space<vmem>>, %arg3: memref<1x32xf32, #tpu.memory_space<vmem>>, %arg4: memref<1x32xf32, #tpu.memory_space<vmem>>, %arg5: memref<1x32xf32, #tpu.memory_space<vmem>>, %arg6: memref<1x32xf32, #tpu.memory_space<vmem>>, %arg7: memref<32x32xf32, #tpu.memory_space<vmem>>, %arg8: memref<1x32xf32, #tpu.memory_space<vmem>>, %arg9: memref<32x32xf32, #tpu.memory_space<vmem>>, %arg10: memref<1x32xf32, #tpu.memory_space<vmem>>, %arg11: memref<32x32xf32, #tpu.memory_space<vmem>>, %arg12: memref<1x32xf32, #tpu.memory_space<vmem>>, %arg13: memref<32x32xf32, #tpu.memory_space<vmem>>, %arg14: memref<1x32xf32, #tpu.memory_space<vmem>>, %arg15: memref<1x8x32xf32, #tpu.memory_space<vmem>>) attributes {dimension_semantics = [#tpu.dimension_semantics<parallel>], iteration_bounds = array<i64: 2>, scalar_prefetch = 0 : i64, scratch_operands = 0 : i64, tpu.core_type = #tpu.core_type<tc>, window_params = [{transform_indices = @transform_0, window_bounds = array<i64: 1, 8, 32>}, {transform_indices = @transform_1, window_bounds = array<i64: 1, 8, 32>}, {pipeline_mode = #tpu.pipeline_mode<synchronous>, transform_indices = @transform_2, window_bounds = array<i64: 1, 32>}, {pipeline_mode = #tpu.pipeline_mode<synchronous>, transform_indices = @transform_3, window_bounds = array<i64: 1, 32>}, {pipeline_mode = #tpu.pipeline_mode<synchronous>, transform_indices = @transform_4, window_bounds = array<i64: 1, 32>}, {pipeline_mode = #tpu.pipeline_mode<synchronous>, transform_indices = @transform_5, window_bounds = array<i64: 1, 32>}, {pipeline_mode = #tpu.pipeline_mode<synchronous>, transform_indices = @transform_6, window_bounds = array<i64: 32, 32>}, {pipeline_mode = #tpu.pipeline_mode<synchronous>, transform_indices = @transform_7, window_bounds = array<i64: 1, 32>}, {pipeline_mode = #tpu.pipeline_mode<synchronous>, transform_indices = @transform_8, window_bounds = array<i64: 32, 32>}, {pipeline_mode = #tpu.pipeline_mode<synchronous>, transform_indices = @transform_9, window_bounds = array<i64: 1, 32>}, {pipeline_mode = #tpu.pipeline_mode<synchronous>, transform_indices = @transform_10, window_bounds = array<i64: 32, 32>}, {pipeline_mode = #tpu.pipeline_mode<synchronous>, transform_indices = @transform_11, window_bounds = array<i64: 1, 32>}, {pipeline_mode = #tpu.pipeline_mode<synchronous>, transform_indices = @transform_12, window_bounds = array<i64: 32, 32>}, {pipeline_mode = #tpu.pipeline_mode<synchronous>, transform_indices = @transform_13, window_bounds = array<i64: 1, 32>}, {transform_indices = @transform_14, window_bounds = array<i64: 1, 8, 32>}]} {
    %c0 = arith.constant 0 : index
    %c0_0 = arith.constant 0 : index
    %c0_1 = arith.constant 0 : index
    %0 = vector.load %arg1[%c0, %c0_0, %c0_1] : memref<1x8x32xf32, #tpu.memory_space<vmem>>, vector<1x8x32xf32>
    %1 = vector.shape_cast %0 : vector<1x8x32xf32> to vector<8x32xf32>
    %c0_2 = arith.constant 0 : index
    %c0_3 = arith.constant 0 : index
    %c0_4 = arith.constant 0 : index
    %2 = vector.load %arg2[%c0_2, %c0_3, %c0_4] : memref<1x8x32xf32, #tpu.memory_space<vmem>>, vector<1x8x32xf32>
    %3 = vector.shape_cast %2 : vector<1x8x32xf32> to vector<8x32xf32>
    %c0_5 = arith.constant 0 : index
    %c0_6 = arith.constant 0 : index
    %4 = vector.load %arg3[%c0_5, %c0_6] : memref<1x32xf32, #tpu.memory_space<vmem>>, vector<1x32xf32>
    %c0_7 = arith.constant 0 : index
    %c0_8 = arith.constant 0 : index
    %5 = vector.load %arg4[%c0_7, %c0_8] : memref<1x32xf32, #tpu.memory_space<vmem>>, vector<1x32xf32>
    %cst = arith.constant dense<0.000000e+00> : vector<8xf32>
    %6 = vector.multi_reduction <add>, %1, %cst [1] : vector<8x32xf32> to vector<8xf32>
    %7 = vector.shape_cast %6 : vector<8xf32> to vector<8x1xf32>
    %cst_9 = arith.constant 3.200000e+01 : f32
    %8 = vector.broadcast %cst_9 : f32 to vector<8x1xf32>
    %9 = arith.divf %7, %8 : vector<8x1xf32>
    %10 = vector.broadcast %9 : vector<8x1xf32> to vector<8x32xf32>
    %11 = arith.subf %1, %10 : vector<8x32xf32>
    %12 = arith.mulf %11, %11 : vector<8x32xf32>
    %cst_10 = arith.constant dense<0.000000e+00> : vector<8xf32>
    %13 = vector.multi_reduction <add>, %12, %cst_10 [1] : vector<8x32xf32> to vector<8xf32>
    %14 = vector.shape_cast %13 : vector<8xf32> to vector<8x1xf32>
    %cst_11 = arith.constant 3.200000e+01 : f32
    %15 = vector.broadcast %cst_11 : f32 to vector<8x1xf32>
    %16 = arith.divf %14, %15 : vector<8x1xf32>
    %cst_12 = arith.constant 9.99999997E-7 : f32
    %17 = vector.broadcast %cst_12 : f32 to vector<8x1xf32>
    %18 = arith.addf %16, %17 : vector<8x1xf32>
    %19 = math.rsqrt %18 : vector<8x1xf32>
    %20 = vector.broadcast %19 : vector<8x1xf32> to vector<8x32xf32>
    %21 = arith.mulf %11, %20 : vector<8x32xf32>
    %22 = vector.broadcast %4 : vector<1x32xf32> to vector<8x32xf32>
    %23 = arith.mulf %21, %22 : vector<8x32xf32>
    %24 = vector.broadcast %5 : vector<1x32xf32> to vector<8x32xf32>
    %25 = arith.addf %23, %24 : vector<8x32xf32>
    %c0_13 = arith.constant 0 : index
    %c0_14 = arith.constant 0 : index
    %26 = vector.load %arg5[%c0_13, %c0_14] : memref<1x32xf32, #tpu.memory_space<vmem>>, vector<1x32xf32>
    %c0_15 = arith.constant 0 : index
    %c0_16 = arith.constant 0 : index
    %27 = vector.load %arg6[%c0_15, %c0_16] : memref<1x32xf32, #tpu.memory_space<vmem>>, vector<1x32xf32>
    %cst_17 = arith.constant dense<0.000000e+00> : vector<8xf32>
    %28 = vector.multi_reduction <add>, %3, %cst_17 [1] : vector<8x32xf32> to vector<8xf32>
    %29 = vector.shape_cast %28 : vector<8xf32> to vector<8x1xf32>
    %cst_18 = arith.constant 3.200000e+01 : f32
    %30 = vector.broadcast %cst_18 : f32 to vector<8x1xf32>
    %31 = arith.divf %29, %30 : vector<8x1xf32>
    %32 = vector.broadcast %31 : vector<8x1xf32> to vector<8x32xf32>
    %33 = arith.subf %3, %32 : vector<8x32xf32>
    %34 = arith.mulf %33, %33 : vector<8x32xf32>
    %cst_19 = arith.constant dense<0.000000e+00> : vector<8xf32>
    %35 = vector.multi_reduction <add>, %34, %cst_19 [1] : vector<8x32xf32> to vector<8xf32>
    %36 = vector.shape_cast %35 : vector<8xf32> to vector<8x1xf32>
    %cst_20 = arith.constant 3.200000e+01 : f32
    %37 = vector.broadcast %cst_20 : f32 to vector<8x1xf32>
    %38 = arith.divf %36, %37 : vector<8x1xf32>
    %cst_21 = arith.constant 9.99999997E-7 : f32
    %39 = vector.broadcast %cst_21 : f32 to vector<8x1xf32>
    %40 = arith.addf %38, %39 : vector<8x1xf32>
    %41 = math.rsqrt %40 : vector<8x1xf32>
    %42 = vector.broadcast %41 : vector<8x1xf32> to vector<8x32xf32>
    %43 = arith.mulf %33, %42 : vector<8x32xf32>
    %44 = vector.broadcast %26 : vector<1x32xf32> to vector<8x32xf32>
    %45 = arith.mulf %43, %44 : vector<8x32xf32>
    %46 = vector.broadcast %27 : vector<1x32xf32> to vector<8x32xf32>
    %47 = arith.addf %45, %46 : vector<8x32xf32>
    %c0_22 = arith.constant 0 : index
    %c0_23 = arith.constant 0 : index
    %48 = vector.load %arg7[%c0_22, %c0_23] : memref<32x32xf32, #tpu.memory_space<vmem>>, vector<32x32xf32>
    %cst_24 = arith.constant dense<0.000000e+00> : vector<8x32xf32>
    %49 = tpu.matmul %47, %48, %cst_24 {dimension_numbers = #tpu.dot_dimension_numbers<[1], [0], [0], [1], [0, 0, 1, 1], [], []>} : vector<8x32xf32>, vector<32x32xf32>, vector<8x32xf32> -> vector<8x32xf32>
    %c0_25 = arith.constant 0 : index
    %c0_26 = arith.constant 0 : index
    %50 = vector.load %arg8[%c0_25, %c0_26] : memref<1x32xf32, #tpu.memory_space<vmem>>, vector<1x32xf32>
    %51 = vector.broadcast %50 : vector<1x32xf32> to vector<8x32xf32>
    %52 = arith.addf %49, %51 : vector<8x32xf32>
    %c0_27 = arith.constant 0 : index
    %c0_28 = arith.constant 0 : index
    %53 = vector.load %arg9[%c0_27, %c0_28] : memref<32x32xf32, #tpu.memory_space<vmem>>, vector<32x32xf32>
    %cst_29 = arith.constant dense<0.000000e+00> : vector<8x32xf32>
    %54 = tpu.matmul %25, %53, %cst_29 {dimension_numbers = #tpu.dot_dimension_numbers<[1], [0], [0], [1], [0, 0, 1, 1], [], []>} : vector<8x32xf32>, vector<32x32xf32>, vector<8x32xf32> -> vector<8x32xf32>
    %c0_30 = arith.constant 0 : index
    %c0_31 = arith.constant 0 : index
    %55 = vector.load %arg10[%c0_30, %c0_31] : memref<1x32xf32, #tpu.memory_space<vmem>>, vector<1x32xf32>
    %56 = vector.broadcast %55 : vector<1x32xf32> to vector<8x32xf32>
    %57 = arith.addf %54, %56 : vector<8x32xf32>
    %c0_32 = arith.constant 0 : index
    %c0_33 = arith.constant 0 : index
    %58 = vector.load %arg11[%c0_32, %c0_33] : memref<32x32xf32, #tpu.memory_space<vmem>>, vector<32x32xf32>
    %cst_34 = arith.constant dense<0.000000e+00> : vector<8x32xf32>
    %59 = tpu.matmul %25, %58, %cst_34 {dimension_numbers = #tpu.dot_dimension_numbers<[1], [0], [0], [1], [0, 0, 1, 1], [], []>} : vector<8x32xf32>, vector<32x32xf32>, vector<8x32xf32> -> vector<8x32xf32>
    %c0_35 = arith.constant 0 : index
    %c0_36 = arith.constant 0 : index
    %60 = vector.load %arg12[%c0_35, %c0_36] : memref<1x32xf32, #tpu.memory_space<vmem>>, vector<1x32xf32>
    %61 = vector.broadcast %60 : vector<1x32xf32> to vector<8x32xf32>
    %62 = arith.addf %59, %61 : vector<8x32xf32>
    %63 = vector.extract_strided_slice %52 {offsets = [0, 0], sizes = [8, 4], strides = [1, 1]} : vector<8x32xf32> to vector<8x4xf32>
    %64 = vector.extract_strided_slice %57 {offsets = [0, 0], sizes = [8, 4], strides = [1, 1]} : vector<8x32xf32> to vector<8x4xf32>
    %65 = vector.extract_strided_slice %62 {offsets = [0, 0], sizes = [8, 4], strides = [1, 1]} : vector<8x32xf32> to vector<8x4xf32>
    %cst_37 = arith.constant dense<0.000000e+00> : vector<8x8xf32>
    %66 = tpu.matmul %63, %64, %cst_37 {dimension_numbers = #tpu.dot_dimension_numbers<[1], [1], [0], [0], [0, 0, 1, 0], [], []>} : vector<8x4xf32>, vector<8x4xf32>, vector<8x8xf32> -> vector<8x8xf32>
    %cst_38 = arith.constant 5.000000e-01 : f32
    %67 = vector.broadcast %cst_38 : f32 to vector<8x8xf32>
    %68 = arith.mulf %66, %67 : vector<8x8xf32>
    %cst_39 = arith.constant dense<0xFF800000> : vector<8xf32>
    %69 = vector.multi_reduction <maximumf>, %68, %cst_39 [1] : vector<8x8xf32> to vector<8xf32>
    %70 = vector.shape_cast %69 : vector<8xf32> to vector<8x1xf32>
    %71 = vector.broadcast %70 : vector<8x1xf32> to vector<8x8xf32>
    %72 = arith.subf %68, %71 : vector<8x8xf32>
    %73 = math.exp %72 : vector<8x8xf32>
    %cst_40 = arith.constant dense<0.000000e+00> : vector<8xf32>
    %74 = vector.multi_reduction <add>, %73, %cst_40 [1] : vector<8x8xf32> to vector<8xf32>
    %75 = vector.shape_cast %74 : vector<8xf32> to vector<8x1xf32>
    %76 = tpu.reciprocal %75 : vector<8x1xf32> -> vector<8x1xf32>
    %77 = vector.broadcast %76 : vector<8x1xf32> to vector<8x8xf32>
    %78 = arith.mulf %73, %77 : vector<8x8xf32>
    %cst_41 = arith.constant dense<0.000000e+00> : vector<8x4xf32>
    %79 = tpu.matmul %78, %65, %cst_41 {dimension_numbers = #tpu.dot_dimension_numbers<[1], [0], [0], [1], [0, 0, 1, 1], [], []>} : vector<8x8xf32>, vector<8x4xf32>, vector<8x4xf32> -> vector<8x4xf32>
    %80 = vector.extract_strided_slice %52 {offsets = [0, 4], sizes = [8, 4], strides = [1, 1]} : vector<8x32xf32> to vector<8x4xf32>
    %81 = vector.extract_strided_slice %57 {offsets = [0, 4], sizes = [8, 4], strides = [1, 1]} : vector<8x32xf32> to vector<8x4xf32>
    %82 = vector.extract_strided_slice %62 {offsets = [0, 4], sizes = [8, 4], strides = [1, 1]} : vector<8x32xf32> to vector<8x4xf32>
    %cst_42 = arith.constant dense<0.000000e+00> : vector<8x8xf32>
    %83 = tpu.matmul %80, %81, %cst_42 {dimension_numbers = #tpu.dot_dimension_numbers<[1], [1], [0], [0], [0, 0, 1, 0], [], []>} : vector<8x4xf32>, vector<8x4xf32>, vector<8x8xf32> -> vector<8x8xf32>
    %cst_43 = arith.constant 5.000000e-01 : f32
    %84 = vector.broadcast %cst_43 : f32 to vector<8x8xf32>
    %85 = arith.mulf %83, %84 : vector<8x8xf32>
    %cst_44 = arith.constant dense<0xFF800000> : vector<8xf32>
    %86 = vector.multi_reduction <maximumf>, %85, %cst_44 [1] : vector<8x8xf32> to vector<8xf32>
    %87 = vector.shape_cast %86 : vector<8xf32> to vector<8x1xf32>
    %88 = vector.broadcast %87 : vector<8x1xf32> to vector<8x8xf32>
    %89 = arith.subf %85, %88 : vector<8x8xf32>
    %90 = math.exp %89 : vector<8x8xf32>
    %cst_45 = arith.constant dense<0.000000e+00> : vector<8xf32>
    %91 = vector.multi_reduction <add>, %90, %cst_45 [1] : vector<8x8xf32> to vector<8xf32>
    %92 = vector.shape_cast %91 : vector<8xf32> to vector<8x1xf32>
    %93 = tpu.reciprocal %92 : vector<8x1xf32> -> vector<8x1xf32>
    %94 = vector.broadcast %93 : vector<8x1xf32> to vector<8x8xf32>
    %95 = arith.mulf %90, %94 : vector<8x8xf32>
    %cst_46 = arith.constant dense<0.000000e+00> : vector<8x4xf32>
    %96 = tpu.matmul %95, %82, %cst_46 {dimension_numbers = #tpu.dot_dimension_numbers<[1], [0], [0], [1], [0, 0, 1, 1], [], []>} : vector<8x8xf32>, vector<8x4xf32>, vector<8x4xf32> -> vector<8x4xf32>
    %97 = vector.extract_strided_slice %52 {offsets = [0, 8], sizes = [8, 4], strides = [1, 1]} : vector<8x32xf32> to vector<8x4xf32>
    %98 = vector.extract_strided_slice %57 {offsets = [0, 8], sizes = [8, 4], strides = [1, 1]} : vector<8x32xf32> to vector<8x4xf32>
    %99 = vector.extract_strided_slice %62 {offsets = [0, 8], sizes = [8, 4], strides = [1, 1]} : vector<8x32xf32> to vector<8x4xf32>
    %cst_47 = arith.constant dense<0.000000e+00> : vector<8x8xf32>
    %100 = tpu.matmul %97, %98, %cst_47 {dimension_numbers = #tpu.dot_dimension_numbers<[1], [1], [0], [0], [0, 0, 1, 0], [], []>} : vector<8x4xf32>, vector<8x4xf32>, vector<8x8xf32> -> vector<8x8xf32>
    %cst_48 = arith.constant 5.000000e-01 : f32
    %101 = vector.broadcast %cst_48 : f32 to vector<8x8xf32>
    %102 = arith.mulf %100, %101 : vector<8x8xf32>
    %cst_49 = arith.constant dense<0xFF800000> : vector<8xf32>
    %103 = vector.multi_reduction <maximumf>, %102, %cst_49 [1] : vector<8x8xf32> to vector<8xf32>
    %104 = vector.shape_cast %103 : vector<8xf32> to vector<8x1xf32>
    %105 = vector.broadcast %104 : vector<8x1xf32> to vector<8x8xf32>
    %106 = arith.subf %102, %105 : vector<8x8xf32>
    %107 = math.exp %106 : vector<8x8xf32>
    %cst_50 = arith.constant dense<0.000000e+00> : vector<8xf32>
    %108 = vector.multi_reduction <add>, %107, %cst_50 [1] : vector<8x8xf32> to vector<8xf32>
    %109 = vector.shape_cast %108 : vector<8xf32> to vector<8x1xf32>
    %110 = tpu.reciprocal %109 : vector<8x1xf32> -> vector<8x1xf32>
    %111 = vector.broadcast %110 : vector<8x1xf32> to vector<8x8xf32>
    %112 = arith.mulf %107, %111 : vector<8x8xf32>
    %cst_51 = arith.constant dense<0.000000e+00> : vector<8x4xf32>
    %113 = tpu.matmul %112, %99, %cst_51 {dimension_numbers = #tpu.dot_dimension_numbers<[1], [0], [0], [1], [0, 0, 1, 1], [], []>} : vector<8x8xf32>, vector<8x4xf32>, vector<8x4xf32> -> vector<8x4xf32>
    %114 = vector.extract_strided_slice %52 {offsets = [0, 12], sizes = [8, 4], strides = [1, 1]} : vector<8x32xf32> to vector<8x4xf32>
    %115 = vector.extract_strided_slice %57 {offsets = [0, 12], sizes = [8, 4], strides = [1, 1]} : vector<8x32xf32> to vector<8x4xf32>
    %116 = vector.extract_strided_slice %62 {offsets = [0, 12], sizes = [8, 4], strides = [1, 1]} : vector<8x32xf32> to vector<8x4xf32>
    %cst_52 = arith.constant dense<0.000000e+00> : vector<8x8xf32>
    %117 = tpu.matmul %114, %115, %cst_52 {dimension_numbers = #tpu.dot_dimension_numbers<[1], [1], [0], [0], [0, 0, 1, 0], [], []>} : vector<8x4xf32>, vector<8x4xf32>, vector<8x8xf32> -> vector<8x8xf32>
    %cst_53 = arith.constant 5.000000e-01 : f32
    %118 = vector.broadcast %cst_53 : f32 to vector<8x8xf32>
    %119 = arith.mulf %117, %118 : vector<8x8xf32>
    %cst_54 = arith.constant dense<0xFF800000> : vector<8xf32>
    %120 = vector.multi_reduction <maximumf>, %119, %cst_54 [1] : vector<8x8xf32> to vector<8xf32>
    %121 = vector.shape_cast %120 : vector<8xf32> to vector<8x1xf32>
    %122 = vector.broadcast %121 : vector<8x1xf32> to vector<8x8xf32>
    %123 = arith.subf %119, %122 : vector<8x8xf32>
    %124 = math.exp %123 : vector<8x8xf32>
    %cst_55 = arith.constant dense<0.000000e+00> : vector<8xf32>
    %125 = vector.multi_reduction <add>, %124, %cst_55 [1] : vector<8x8xf32> to vector<8xf32>
    %126 = vector.shape_cast %125 : vector<8xf32> to vector<8x1xf32>
    %127 = tpu.reciprocal %126 : vector<8x1xf32> -> vector<8x1xf32>
    %128 = vector.broadcast %127 : vector<8x1xf32> to vector<8x8xf32>
    %129 = arith.mulf %124, %128 : vector<8x8xf32>
    %cst_56 = arith.constant dense<0.000000e+00> : vector<8x4xf32>
    %130 = tpu.matmul %129, %116, %cst_56 {dimension_numbers = #tpu.dot_dimension_numbers<[1], [0], [0], [1], [0, 0, 1, 1], [], []>} : vector<8x8xf32>, vector<8x4xf32>, vector<8x4xf32> -> vector<8x4xf32>
    %131 = vector.extract_strided_slice %52 {offsets = [0, 16], sizes = [8, 4], strides = [1, 1]} : vector<8x32xf32> to vector<8x4xf32>
    %132 = vector.extract_strided_slice %57 {offsets = [0, 16], sizes = [8, 4], strides = [1, 1]} : vector<8x32xf32> to vector<8x4xf32>
    %133 = vector.extract_strided_slice %62 {offsets = [0, 16], sizes = [8, 4], strides = [1, 1]} : vector<8x32xf32> to vector<8x4xf32>
    %cst_57 = arith.constant dense<0.000000e+00> : vector<8x8xf32>
    %134 = tpu.matmul %131, %132, %cst_57 {dimension_numbers = #tpu.dot_dimension_numbers<[1], [1], [0], [0], [0, 0, 1, 0], [], []>} : vector<8x4xf32>, vector<8x4xf32>, vector<8x8xf32> -> vector<8x8xf32>
    %cst_58 = arith.constant 5.000000e-01 : f32
    %135 = vector.broadcast %cst_58 : f32 to vector<8x8xf32>
    %136 = arith.mulf %134, %135 : vector<8x8xf32>
    %cst_59 = arith.constant dense<0xFF800000> : vector<8xf32>
    %137 = vector.multi_reduction <maximumf>, %136, %cst_59 [1] : vector<8x8xf32> to vector<8xf32>
    %138 = vector.shape_cast %137 : vector<8xf32> to vector<8x1xf32>
    %139 = vector.broadcast %138 : vector<8x1xf32> to vector<8x8xf32>
    %140 = arith.subf %136, %139 : vector<8x8xf32>
    %141 = math.exp %140 : vector<8x8xf32>
    %cst_60 = arith.constant dense<0.000000e+00> : vector<8xf32>
    %142 = vector.multi_reduction <add>, %141, %cst_60 [1] : vector<8x8xf32> to vector<8xf32>
    %143 = vector.shape_cast %142 : vector<8xf32> to vector<8x1xf32>
    %144 = tpu.reciprocal %143 : vector<8x1xf32> -> vector<8x1xf32>
    %145 = vector.broadcast %144 : vector<8x1xf32> to vector<8x8xf32>
    %146 = arith.mulf %141, %145 : vector<8x8xf32>
    %cst_61 = arith.constant dense<0.000000e+00> : vector<8x4xf32>
    %147 = tpu.matmul %146, %133, %cst_61 {dimension_numbers = #tpu.dot_dimension_numbers<[1], [0], [0], [1], [0, 0, 1, 1], [], []>} : vector<8x8xf32>, vector<8x4xf32>, vector<8x4xf32> -> vector<8x4xf32>
    %148 = vector.extract_strided_slice %52 {offsets = [0, 20], sizes = [8, 4], strides = [1, 1]} : vector<8x32xf32> to vector<8x4xf32>
    %149 = vector.extract_strided_slice %57 {offsets = [0, 20], sizes = [8, 4], strides = [1, 1]} : vector<8x32xf32> to vector<8x4xf32>
    %150 = vector.extract_strided_slice %62 {offsets = [0, 20], sizes = [8, 4], strides = [1, 1]} : vector<8x32xf32> to vector<8x4xf32>
    %cst_62 = arith.constant dense<0.000000e+00> : vector<8x8xf32>
    %151 = tpu.matmul %148, %149, %cst_62 {dimension_numbers = #tpu.dot_dimension_numbers<[1], [1], [0], [0], [0, 0, 1, 0], [], []>} : vector<8x4xf32>, vector<8x4xf32>, vector<8x8xf32> -> vector<8x8xf32>
    %cst_63 = arith.constant 5.000000e-01 : f32
    %152 = vector.broadcast %cst_63 : f32 to vector<8x8xf32>
    %153 = arith.mulf %151, %152 : vector<8x8xf32>
    %cst_64 = arith.constant dense<0xFF800000> : vector<8xf32>
    %154 = vector.multi_reduction <maximumf>, %153, %cst_64 [1] : vector<8x8xf32> to vector<8xf32>
    %155 = vector.shape_cast %154 : vector<8xf32> to vector<8x1xf32>
    %156 = vector.broadcast %155 : vector<8x1xf32> to vector<8x8xf32>
    %157 = arith.subf %153, %156 : vector<8x8xf32>
    %158 = math.exp %157 : vector<8x8xf32>
    %cst_65 = arith.constant dense<0.000000e+00> : vector<8xf32>
    %159 = vector.multi_reduction <add>, %158, %cst_65 [1] : vector<8x8xf32> to vector<8xf32>
    %160 = vector.shape_cast %159 : vector<8xf32> to vector<8x1xf32>
    %161 = tpu.reciprocal %160 : vector<8x1xf32> -> vector<8x1xf32>
    %162 = vector.broadcast %161 : vector<8x1xf32> to vector<8x8xf32>
    %163 = arith.mulf %158, %162 : vector<8x8xf32>
    %cst_66 = arith.constant dense<0.000000e+00> : vector<8x4xf32>
    %164 = tpu.matmul %163, %150, %cst_66 {dimension_numbers = #tpu.dot_dimension_numbers<[1], [0], [0], [1], [0, 0, 1, 1], [], []>} : vector<8x8xf32>, vector<8x4xf32>, vector<8x4xf32> -> vector<8x4xf32>
    %165 = vector.extract_strided_slice %52 {offsets = [0, 24], sizes = [8, 4], strides = [1, 1]} : vector<8x32xf32> to vector<8x4xf32>
    %166 = vector.extract_strided_slice %57 {offsets = [0, 24], sizes = [8, 4], strides = [1, 1]} : vector<8x32xf32> to vector<8x4xf32>
    %167 = vector.extract_strided_slice %62 {offsets = [0, 24], sizes = [8, 4], strides = [1, 1]} : vector<8x32xf32> to vector<8x4xf32>
    %cst_67 = arith.constant dense<0.000000e+00> : vector<8x8xf32>
    %168 = tpu.matmul %165, %166, %cst_67 {dimension_numbers = #tpu.dot_dimension_numbers<[1], [1], [0], [0], [0, 0, 1, 0], [], []>} : vector<8x4xf32>, vector<8x4xf32>, vector<8x8xf32> -> vector<8x8xf32>
    %cst_68 = arith.constant 5.000000e-01 : f32
    %169 = vector.broadcast %cst_68 : f32 to vector<8x8xf32>
    %170 = arith.mulf %168, %169 : vector<8x8xf32>
    %cst_69 = arith.constant dense<0xFF800000> : vector<8xf32>
    %171 = vector.multi_reduction <maximumf>, %170, %cst_69 [1] : vector<8x8xf32> to vector<8xf32>
    %172 = vector.shape_cast %171 : vector<8xf32> to vector<8x1xf32>
    %173 = vector.broadcast %172 : vector<8x1xf32> to vector<8x8xf32>
    %174 = arith.subf %170, %173 : vector<8x8xf32>
    %175 = math.exp %174 : vector<8x8xf32>
    %cst_70 = arith.constant dense<0.000000e+00> : vector<8xf32>
    %176 = vector.multi_reduction <add>, %175, %cst_70 [1] : vector<8x8xf32> to vector<8xf32>
    %177 = vector.shape_cast %176 : vector<8xf32> to vector<8x1xf32>
    %178 = tpu.reciprocal %177 : vector<8x1xf32> -> vector<8x1xf32>
    %179 = vector.broadcast %178 : vector<8x1xf32> to vector<8x8xf32>
    %180 = arith.mulf %175, %179 : vector<8x8xf32>
    %cst_71 = arith.constant dense<0.000000e+00> : vector<8x4xf32>
    %181 = tpu.matmul %180, %167, %cst_71 {dimension_numbers = #tpu.dot_dimension_numbers<[1], [0], [0], [1], [0, 0, 1, 1], [], []>} : vector<8x8xf32>, vector<8x4xf32>, vector<8x4xf32> -> vector<8x4xf32>
    %182 = vector.extract_strided_slice %52 {offsets = [0, 28], sizes = [8, 4], strides = [1, 1]} : vector<8x32xf32> to vector<8x4xf32>
    %183 = vector.extract_strided_slice %57 {offsets = [0, 28], sizes = [8, 4], strides = [1, 1]} : vector<8x32xf32> to vector<8x4xf32>
    %184 = vector.extract_strided_slice %62 {offsets = [0, 28], sizes = [8, 4], strides = [1, 1]} : vector<8x32xf32> to vector<8x4xf32>
    %cst_72 = arith.constant dense<0.000000e+00> : vector<8x8xf32>
    %185 = tpu.matmul %182, %183, %cst_72 {dimension_numbers = #tpu.dot_dimension_numbers<[1], [1], [0], [0], [0, 0, 1, 0], [], []>} : vector<8x4xf32>, vector<8x4xf32>, vector<8x8xf32> -> vector<8x8xf32>
    %cst_73 = arith.constant 5.000000e-01 : f32
    %186 = vector.broadcast %cst_73 : f32 to vector<8x8xf32>
    %187 = arith.mulf %185, %186 : vector<8x8xf32>
    %cst_74 = arith.constant dense<0xFF800000> : vector<8xf32>
    %188 = vector.multi_reduction <maximumf>, %187, %cst_74 [1] : vector<8x8xf32> to vector<8xf32>
    %189 = vector.shape_cast %188 : vector<8xf32> to vector<8x1xf32>
    %190 = vector.broadcast %189 : vector<8x1xf32> to vector<8x8xf32>
    %191 = arith.subf %187, %190 : vector<8x8xf32>
    %192 = math.exp %191 : vector<8x8xf32>
    %cst_75 = arith.constant dense<0.000000e+00> : vector<8xf32>
    %193 = vector.multi_reduction <add>, %192, %cst_75 [1] : vector<8x8xf32> to vector<8xf32>
    %194 = vector.shape_cast %193 : vector<8xf32> to vector<8x1xf32>
    %195 = tpu.reciprocal %194 : vector<8x1xf32> -> vector<8x1xf32>
    %196 = vector.broadcast %195 : vector<8x1xf32> to vector<8x8xf32>
    %197 = arith.mulf %192, %196 : vector<8x8xf32>
    %cst_76 = arith.constant dense<0.000000e+00> : vector<8x4xf32>
    %198 = tpu.matmul %197, %184, %cst_76 {dimension_numbers = #tpu.dot_dimension_numbers<[1], [0], [0], [1], [0, 0, 1, 1], [], []>} : vector<8x8xf32>, vector<8x4xf32>, vector<8x4xf32> -> vector<8x4xf32>
    %199 = tpu.concatenate %79, %96, %113, %130, %147, %164, %181, %198 in 1 : vector<8x4xf32>, vector<8x4xf32>, vector<8x4xf32>, vector<8x4xf32>, vector<8x4xf32>, vector<8x4xf32>, vector<8x4xf32>, vector<8x4xf32> -> vector<8x32xf32>
    %c0_77 = arith.constant 0 : index
    %c0_78 = arith.constant 0 : index
    %200 = vector.load %arg13[%c0_77, %c0_78] : memref<32x32xf32, #tpu.memory_space<vmem>>, vector<32x32xf32>
    %cst_79 = arith.constant dense<0.000000e+00> : vector<8x32xf32>
    %201 = tpu.matmul %199, %200, %cst_79 {dimension_numbers = #tpu.dot_dimension_numbers<[1], [0], [0], [1], [0, 0, 1, 1], [], []>} : vector<8x32xf32>, vector<32x32xf32>, vector<8x32xf32> -> vector<8x32xf32>
    %202 = arith.addf %47, %201 : vector<8x32xf32>
    %c0_80 = arith.constant 0 : index
    %c0_81 = arith.constant 0 : index
    %203 = vector.load %arg14[%c0_80, %c0_81] : memref<1x32xf32, #tpu.memory_space<vmem>>, vector<1x32xf32>
    %204 = vector.broadcast %203 : vector<1x32xf32> to vector<8x32xf32>
    %205 = arith.addf %202, %204 : vector<8x32xf32>
    %c0_82 = arith.constant 0 : index
    %c0_83 = arith.constant 0 : index
    %c0_84 = arith.constant 0 : index
    %206 = vector.load %arg15[%c0_82, %c0_83, %c0_84] : memref<1x8x32xf32, #tpu.memory_space<vmem>>, vector<1x8x32xf32>
    %207 = vector.shape_cast %206 : vector<1x8x32xf32> to vector<8x32xf32>
    %208 = vector.shape_cast %205 : vector<8x32xf32> to vector<1x8x32xf32>
    tpu.vector_store %arg15[%c0_82, %c0_83, %c0_84], %208 {strides = array<i32>} : memref<1x8x32xf32, #tpu.memory_space<vmem>>, vector<1x8x32xf32>,
    return
  }
  func.func @transform_0(%arg0: i32) -> (i32, i32, i32) {
    %c0_i32 = arith.constant 0 : i32
    %c0_i32_0 = arith.constant 0 : i32
    %c0_i32_1 = arith.constant 0 : i32
    return %arg0, %c0_i32, %c0_i32_0 : i32, i32, i32
  }
  func.func @transform_1(%arg0: i32) -> (i32, i32, i32) {
    %c0_i32 = arith.constant 0 : i32
    %c0_i32_0 = arith.constant 0 : i32
    %c0_i32_1 = arith.constant 0 : i32
    return %arg0, %c0_i32, %c0_i32_0 : i32, i32, i32
  }
  func.func @transform_2(%arg0: i32) -> (i32, i32) {
    %c0_i32 = arith.constant 0 : i32
    %c0_i32_0 = arith.constant 0 : i32
    %c0_i32_1 = arith.constant 0 : i32
    return %c0_i32, %c0_i32_0 : i32, i32
  }
  func.func @transform_3(%arg0: i32) -> (i32, i32) {
    %c0_i32 = arith.constant 0 : i32
    %c0_i32_0 = arith.constant 0 : i32
    %c0_i32_1 = arith.constant 0 : i32
    return %c0_i32, %c0_i32_0 : i32, i32
  }
  func.func @transform_4(%arg0: i32) -> (i32, i32) {
    %c0_i32 = arith.constant 0 : i32
    %c0_i32_0 = arith.constant 0 : i32
    %c0_i32_1 = arith.constant 0 : i32
    return %c0_i32, %c0_i32_0 : i32, i32
  }
  func.func @transform_5(%arg0: i32) -> (i32, i32) {
    %c0_i32 = arith.constant 0 : i32
    %c0_i32_0 = arith.constant 0 : i32
    %c0_i32_1 = arith.constant 0 : i32
    return %c0_i32, %c0_i32_0 : i32, i32
  }
  func.func @transform_6(%arg0: i32) -> (i32, i32) {
    %c0_i32 = arith.constant 0 : i32
    %c0_i32_0 = arith.constant 0 : i32
    %c0_i32_1 = arith.constant 0 : i32
    return %c0_i32, %c0_i32_0 : i32, i32
  }
  func.func @transform_7(%arg0: i32) -> (i32, i32) {
    %c0_i32 = arith.constant 0 : i32
    %c0_i32_0 = arith.constant 0 : i32
    %c0_i32_1 = arith.constant 0 : i32
    return %c0_i32, %c0_i32_0 : i32, i32
  }
  func.func @transform_8(%arg0: i32) -> (i32, i32) {
    %c0_i32 = arith.constant 0 : i32
    %c0_i32_0 = arith.constant 0 : i32
    %c0_i32_1 = arith.constant 0 : i32
    return %c0_i32, %c0_i32_0 : i32, i32
  }
  func.func @transform_9(%arg0: i32) -> (i32, i32) {
    %c0_i32 = arith.constant 0 : i32
    %c0_i32_0 = arith.constant 0 : i32
    %c0_i32_1 = arith.constant 0 : i32
    return %c0_i32, %c0_i32_0 : i32, i32
  }
  func.func @transform_10(%arg0: i32) -> (i32, i32) {
    %c0_i32 = arith.constant 0 : i32
    %c0_i32_0 = arith.constant 0 : i32
    %c0_i32_1 = arith.constant 0 : i32
    return %c0_i32, %c0_i32_0 : i32, i32
  }
  func.func @transform_11(%arg0: i32) -> (i32, i32) {
    %c0_i32 = arith.constant 0 : i32
    %c0_i32_0 = arith.constant 0 : i32
    %c0_i32_1 = arith.constant 0 : i32
    return %c0_i32, %c0_i32_0 : i32, i32
  }
  func.func @transform_12(%arg0: i32) -> (i32, i32) {
    %c0_i32 = arith.constant 0 : i32
    %c0_i32_0 = arith.constant 0 : i32
    %c0_i32_1 = arith.constant 0 : i32
    return %c0_i32, %c0_i32_0 : i32, i32
  }
  func.func @transform_13(%arg0: i32) -> (i32, i32) {
    %c0_i32 = arith.constant 0 : i32
    %c0_i32_0 = arith.constant 0 : i32
    %c0_i32_1 = arith.constant 0 : i32
    return %c0_i32, %c0_i32_0 : i32, i32
  }
  func.func @transform_14(%arg0: i32) -> (i32, i32, i32) {
    %c0_i32 = arith.constant 0 : i32
    %c0_i32_0 = arith.constant 0 : i32
    %c0_i32_1 = arith.constant 0 : i32
    return %arg0, %c0_i32, %c0_i32_0 : i32, i32, i32
  }
}

</mosaic_0001>

<bundles_post_ra>
// kernel: temporal_encoder_forward.25
= control target key start
LH: loop header
LB: loop body
LE: loop exit
PB: predicated region body
PF: predicated region fallthrough
CT: control target
= control target key end

     0   :  { %vm19_vm0 = vcmask 261120   ;;  %s167_s0 = inlined_call_operand.vmem [shape: f32[16,32], index: 0, kind: input, shape index: {}]   ;;  %s168_s1 = inlined_call_operand.vmem [shape: f32[1,32], index: 1, kind: input, shape index: {}]   ;;  %s169_s2 = inlined_call_operand.vmem [shape: f32[1,32], index: 2, kind: input, shape index: {}]   ;;  %s170_s3 = inlined_call_operand.hbm [shape: f32[16,32], index: 3, kind: output, shape index: {}]  }
   0x1   :  { %v15_v0 = vld [vmem:[%s167_s0] sm:$0xff]  ;;  %v16_v1 = vld [vmem:[%s167_s0 + $0x8] sm:$0xff] }
   0x2   :  { %8 = vsyncpa [#allocation3], 0  ;;  %v20_v2 = vsel %vm19_vm0, %v15_v0, 0.0  ;;  %v23_v3 = vsel %vm19_vm0, %v16_v1, 0.0  ;;  %v81_v21 = vld [vmem:[%s168_s1] ss:$0 sm:$0xff] }
   0x3   :  { %21 = vadd.xlane.f32.xlu0 %v20_v2  ;;  %v82_v23 = vld [vmem:[%s169_s2] ss:$0 sm:$0xff]  ;;  %s114_s19 = smov [#allocation2]  }
   0x4   :  { %s70_s20 = sshll.u32 %s114_s19, 4  ;;  %s71_s20 = int_to_ptr.vmem [resolvable:$true] %s70_s20 }
   0x5   :  { %s90_s21 = scalar_lea.vmem %s71_s20, 256  ;;  %p95_p1 = scmp.lt.s32.totalorder %s71_s20, %s71_s20 }
   0x6   :  { %p91_p0 = scmp.ne.s32.totalorder %s71_s20, %s90_s21  ;;  %p96_p2 = scmp.lt.s32.totalorder %s90_s21, %s90_s21 }
   0x7   :  { %24 = vadd.xlane.f32.xlu0 %v23_v3 }
   0x8   :  { %p97_p3 = por %p96_p2, %p95_p1 }
   0xa   :  { %p98_p4 = pnand %p97_p3, %p91_p0 }
  0x90   :  { %v22_v4 = vpop.xlane.xlu0 %21 }
  0x91   :  { %v27_v5 = vmul.f32 0.03125, %v22_v4 }
  0x93   :  { %v29_v6 = vsub.f32 %v15_v0, %v27_v5 }
  0x94   :  { %v25_v7 = vpop.xlane.xlu0 %24 }
  0x95   :  { %v28_v8 = vmul.f32 0.03125, %v25_v7  ;;  %v31_v9 = vmul.f32 %v29_v6, %v29_v6 }
  0x97   :  { %v30_v10 = vsub.f32 %v16_v1, %v28_v8  ;;  %v33_v11 = vsel %vm19_vm0, %v31_v9, 0.0 }
  0x98   :  { %34 = vadd.xlane.f32.xlu1 %v33_v11 }
  0x99   :  { %v32_v12 = vmul.f32 %v30_v10, %v30_v10 }
  0x9b   :  { %v36_v13 = vsel %vm19_vm0, %v32_v12, 0.0 }
  0x9c   :  { %37 = vadd.xlane.f32.xlu1 %v36_v13 }
 0x125   :  { %v35_v14 = vpop.xlane.xlu1 %34 }
 0x126   :  { %v39_v15 = vmul.f32 0.03125, %v35_v14 }
 0x128   :  { %v41_v16 = vadd.f32 1e-06, %v39_v15 }
 0x129   :  { %v38_v17 = vpop.xlane.xlu1 %37 }
 0x12a   :  { %86 = vrsqrt.f32 %v41_v16  ;;  %v40_v18 = vmul.f32 0.03125, %v38_v17 }
 0x12c   :  { %v42_v19 = vadd.f32 1e-06, %v40_v18 }
 0x12e   :  { %88 = vrsqrt.f32 %v42_v19 }
 0x134   :  { %v87_v20 = vpop.eup %86 }
 0x135   :  { %v45_v22 = vmul.f32 %v87_v20, %v29_v6 }
 0x137   :  { %v53_v24 = vmul.f32 %v81_v21, %v45_v22 }
 0x138   :  { %v89_v25 = vpop.eup %88 }
 0x139   :  { %v46_v26 = vmul.f32 %v89_v25, %v30_v10  ;;  %v61_v27 = vadd.f32 %v82_v23, %v53_v24 }
 0x13b   :  { %v54_v28 = vmul.f32 %v81_v21, %v46_v26  ;;  %63 = vst.msk [vmem:[#allocation2] sm:$0xff] %vm19_vm0, %v61_v27 }
 0x13d   :  { %v62_v29 = vadd.f32 %v82_v23, %v54_v28 }
 0x13f   :  { %64 = vst.msk [vmem:[#allocation2 + $0x8] sm:$0xff] %vm19_vm0, %v62_v29 }
 0x140   :  { %101 = shalt.err (!%p98_p4)
}
 0x141   :  { %s102_s22 = scalar_lea.hbm %s170_s3, 256 }
 0x142   :  { %p103_p5 = scmp.ne.s32.totalorder %s170_s3, %s102_s22  ;;  %p106_p6 = scmp.lt.u32.totalorder %s102_s22, %s170_s3 }
 0x144   :  { %p108_p7 = pnand %p106_p6, %p103_p5 }
 0x146   :  { %111 = shalt.err (!%p108_p7)
}
 0x147   :  { %s115_s27 = smov 128   ;;  %s116_s28 = smov 8  }
 0x148   :  { %76 = dma.vmem_to_hbm [thread:$0]  %s71_s20, 256, %s170_s3, [#allocation3], %s115_s27, %s115_s27, %s116_s28  }
 0x149   :  { %112 = dma.done.wait [#allocation3], 256  }
 0x14a   :  { %113 = vsyncadd [#allocation3], 4294967040 }
 0x14b   :  { %80 = vsyncpa [#allocation3], 1 }

// kernel: temporal_encoder_forward.14
= control target key start
LH: loop header
LB: loop body
LE: loop exit
PB: predicated region body
PF: predicated region fallthrough
CT: control target
= control target key end

     0   :  { %vm37_vm0 = vcmask 261120   ;;  %v444_v62 = vmov 0.0   ;;  %s594_s0 = inlined_call_operand.vmem [shape: f32[16,32], index: 0, kind: input, shape index: {}, may-alias: {0,1}]   ;;  %s595_s4 = inlined_call_operand.vmem [shape: f32[32,128], index: 4, kind: input, shape index: {}]   ;;  %s596_s2 = inlined_call_operand.vmem [shape: f32[1,32], index: 2, kind: input, shape index: {}]   ;;  %s597_s3 = inlined_call_operand.vmem [shape: f32[1,32], index: 3, kind: input, shape index: {}]   ;;  %s598_s6 = inlined_call_operand.vmem [shape: f32[128,32], index: 6, kind: input, shape index: {}]   ;;  %s599_s5 = inlined_call_operand.vmem [shape: f32[1,128], index: 5, kind: input, shape index: {}]   ;;  %s600_s7 = inlined_call_operand.vmem [shape: f32[1,32], index: 7, kind: input, shape index: {}]   ;;  %s601_s1 = inlined_call_operand.vmem [shape: f32[16,32], index: 1, kind: input, shape index: {}, may-alias: {0,1}]   ;;  %s602_s8 = inlined_call_operand.vmem [shape: f32[16,32], index: 8, kind: output, shape index: {}]  }
   0x1   :  { %v33_v0 = vld [vmem:[%s594_s0] sm:$0xff]  ;;  %v34_v1 = vld [vmem:[%s594_s0 + $0x8] sm:$0xff]  ;;  %v89_v17 = vld [vmem:[%s595_s4 + $0x10] sm:$0xff]  ;;  %84 = vst.msk [vmem:[#allocation3 + $0x8] sm:$0xff] %vm37_vm0, %v444_v62 }
   0x2   :  { %v38_v2 = vsel %vm37_vm0, %v33_v0, 0.0  ;;  %v41_v3 = vsel %vm37_vm0, %v34_v1, 0.0  ;;  %v87_v14 = vld [vmem:[%s595_s4] sm:$0xff]  ;;  %v88_v15 = vld [vmem:[%s595_s4 + $0x8] sm:$0xff]  ;;  %v90_v18 = vld [vmem:[%s595_s4 + $0x18] sm:$0xff]  ;;  %83 = vst.msk [vmem:[#allocation3] sm:$0xff] %vm37_vm0, %v444_v62 }
   0x3   :  { %39 = vadd.xlane.f32.xlu0 %v38_v2  ;;  %v395_v16 = vpack.c.bf16 %v88_v15, %v87_v14  ;;  %v399_v19 = vpack.c.bf16 %v90_v18, %v89_v17  ;;  %v319_v27 = vld [vmem:[%s596_s2] ss:$0 sm:$0xff]  ;;  %v201_v39 = vld [vmem:[%s598_s6 + $0x8] sm:$0xff]  ;;  %v202_v41 = vld [vmem:[%s598_s6 + $0x10] sm:$0xff] }
   0x4   :  { %v320_v29 = vld [vmem:[%s597_s3] ss:$0 sm:$0xff]  ;;  %v203_v42 = vld [vmem:[%s598_s6 + $0x18] sm:$0xff]  ;;  %v205_v45 = vld [vmem:[%s598_s6 + $0x28] sm:$0xff] }
   0x5   :  { %396 = vmatprep.subr.bf16.mxu0 %v395_v16  ;;  %v200_v38 = vld [vmem:[%s598_s6] sm:$0xff]  ;;  %v407_v43 = vpack.c.bf16 %v203_v42, %v202_v41  ;;  %v206_v47 = vld [vmem:[%s598_s6 + $0x30] sm:$0xff]  ;;  %v207_v48 = vld [vmem:[%s598_s6 + $0x38] sm:$0xff] }
   0x6   :  { %398 = vmatpush3.bf16.msra.mxu0 %v395_v16  ;;  %v403_v40 = vpack.c.bf16 %v201_v39, %v200_v38  ;;  %v204_v44 = vld [vmem:[%s598_s6 + $0x20] sm:$0xff]  ;;  %v415_v49 = vpack.c.bf16 %v207_v48, %v206_v47  ;;  %v209_v51 = vld [vmem:[%s598_s6 + $0x48] sm:$0xff]  ;;  %v210_v52 = vld [vmem:[%s598_s6 + $0x50] sm:$0xff] }
   0x7   :  { %42 = vadd.xlane.f32.xlu0 %v41_v3  ;;  %400 = vmatprep.subr.bf16.mxu0 %v399_v19  ;;  %v411_v46 = vpack.c.bf16 %v205_v45, %v204_v44  ;;  %v208_v50 = vld [vmem:[%s598_s6 + $0x40] sm:$0xff]  ;;  %v211_v54 = vld [vmem:[%s598_s6 + $0x58] sm:$0xff]  ;;  %v213_v57 = vld [vmem:[%s598_s6 + $0x68] sm:$0xff] }
   0x8   :  { %404 = vmatprep.subr.bf16.mxu1 %v403_v40  ;;  %v419_v53 = vpack.c.bf16 %v209_v51, %v208_v50  ;;  %v423_v55 = vpack.c.bf16 %v211_v54, %v210_v52  ;;  %v212_v56 = vld [vmem:[%s598_s6 + $0x60] sm:$0xff]  ;;  %v214_v59 = vld [vmem:[%s598_s6 + $0x70] sm:$0xff]  ;;  %v215_v60 = vld [vmem:[%s598_s6 + $0x78] sm:$0xff] }
   0x9   :  { %406 = vmatpush3.bf16.msra.mxu1 %v403_v40  ;;  %v427_v58 = vpack.c.bf16 %v213_v57, %v212_v56  ;;  %v431_v61 = vpack.c.bf16 %v215_v60, %v214_v59  ;;  %v321_v63 = vld [vmem:[%s599_s5] ss:$0 sm:$0xff] }
   0xa   :  { %402 = vmatpush3.bf16.msra.mxu0 %v399_v19  ;;  %408 = vmatprep.subr.bf16.mxu1 %v407_v43 }
   0xd   :  { %410 = vmatpush3.bf16.msra.mxu1 %v407_v43 }
   0xe   :  { %412 = vmatprep.subr.bf16.mxu1 %v411_v46 }
  0x11   :  { %414 = vmatpush3.bf16.msra.mxu1 %v411_v46 }
  0x12   :  { %416 = vmatprep.subr.bf16.mxu1 %v415_v49 }
  0x15   :  { %418 = vmatpush3.bf16.msra.mxu1 %v415_v49 }
  0x16   :  { %420 = vmatprep.subr.bf16.mxu1 %v419_v53 }
  0x19   :  { %422 = vmatpush3.bf16.msra.mxu1 %v419_v53 }
  0x1a   :  { %424 = vmatprep.subr.bf16.mxu1 %v423_v55 }
  0x1d   :  { %426 = vmatpush3.bf16.msra.mxu1 %v423_v55 }
  0x1e   :  { %428 = vmatprep.subr.bf16.mxu1 %v427_v58 }
  0x21   :  { %430 = vmatpush3.bf16.msra.mxu1 %v427_v58 }
  0x22   :  { %432 = vmatprep.subr.bf16.mxu1 %v431_v61 }
  0x25   :  { %434 = vmatpush3.bf16.msra.mxu1 %v431_v61 }
  0x90   :  { %v40_v4 = vpop.xlane.xlu0 %39 }
  0x91   :  { %v45_v5 = vmul.f32 0.03125, %v40_v4 }
  0x93   :  { %v47_v6 = vsub.f32 %v33_v0, %v45_v5 }
  0x94   :  { %v43_v7 = vpop.xlane.xlu0 %42 }
  0x95   :  { %v46_v8 = vmul.f32 0.03125, %v43_v7  ;;  %v49_v9 = vmul.f32 %v47_v6, %v47_v6 }
  0x97   :  { %v48_v10 = vsub.f32 %v34_v1, %v46_v8  ;;  %v51_v11 = vsel %vm37_vm0, %v49_v9, 0.0 }
  0x98   :  { %52 = vadd.xlane.f32.xlu1 %v51_v11 }
  0x99   :  { %v50_v12 = vmul.f32 %v48_v10, %v48_v10 }
  0x9b   :  { %v54_v13 = vsel %vm37_vm0, %v50_v12, 0.0 }
  0x9c   :  { %55 = vadd.xlane.f32.xlu1 %v54_v13 }
 0x125   :  { %v53_v20 = vpop.xlane.xlu1 %52 }
 0x126   :  { %v57_v21 = vmul.f32 0.03125, %v53_v20 }
 0x128   :  { %v59_v22 = vadd.f32 1e-06, %v57_v21 }
 0x129   :  { %v56_v23 = vpop.xlane.xlu1 %55 }
 0x12a   :  { %436 = vrsqrt.f32 %v59_v22  ;;  %v58_v24 = vmul.f32 0.03125, %v56_v23  ;;  %v199_v22 = vld [vmem:[#allocation3 + $0x8] sm:$0xff]  ;;  %v198_v23 = vld [vmem:[#allocation3] sm:$0xff] }
 0x12c   :  { %v60_v25 = vadd.f32 1e-06, %v58_v24 }
 0x12e   :  { %438 = vrsqrt.f32 %v60_v25 }
 0x134   :  { %v437_v26 = vpop.eup %436 }
 0x135   :  { %v63_v28 = vmul.f32 %v437_v26, %v47_v6 }
 0x137   :  { %v71_v30 = vmul.f32 %v319_v27, %v63_v28  ;;  %v324_v28 = vld [vmem:[%s600_s7] ss:$0 sm:$0xff] }
 0x138   :  { %v439_v31 = vpop.eup %438 }
 0x139   :  { %v79_v32 = vadd.f32 %v320_v29, %v71_v30  ;;  %v64_v33 = vmul.f32 %v439_v31, %v48_v10  ;;  %v310_v30 = vld [vmem:[%s601_s1 + $0x8] sm:$0xff] }
 0x13b   :  { %81 = vst.msk [vmem:[#allocation2] sm:$0xff] %vm37_vm0, %v79_v32  ;;  %v72_v34 = vmul.f32 %v319_v27, %v64_v33  ;;  %v309_v33 = vld [vmem:[%s601_s1] sm:$0xff] }
 0x13d   :  { %v80_v35 = vadd.f32 %v320_v29, %v72_v34 }
 0x13f   :  { %82 = vst.msk [vmem:[#allocation2 + $0x8] sm:$0xff] %vm37_vm0, %v80_v35 }
 0x142   :  { %v85_v36 = vld [vmem:[#allocation2] sm:$0xff] }
 0x143   :  { %357 = vmatprep.mubr.msk.f32.mxu0 %vm37_vm0, %v85_v36 }
 0x146   :  { %v86_v37 = vld [vmem:[#allocation2 + $0x8] sm:$0xff] }
 0x147   :  { %358 = vmatmul.mubr.msk.f32.vlgmr.msra.gmra.mrb[0].mxu0 %vm37_vm0, %v86_v37 }
 0x21a   :  { %v359_v0 = vpop.f32.mrb[0].mxu0 }
 0x21b   :  { %v177_v1 = vadd.f32 %v359_v0, %v321_v63  ;;  %v171_v2 = vpop.f32.mrb[1].mxu0 }
 0x21c   :  { %v172_v3 = vadd.f32 %v321_v63, %v171_v2 }
 0x21d   :  { %v181_v4 = vmul.f32 %v177_v1, %v177_v1 }
 0x21e   :  { %v180_v5 = vmul.f32 %v172_v3, %v172_v3 }
 0x21f   :  { %v183_v6 = vmul.f32 %v181_v4, %v177_v1 }
 0x220   :  { %v182_v7 = vmul.f32 %v180_v5, %v172_v3 }
 0x221   :  { %v185_v8 = vmul.f32 0.044715, %v183_v6 }
 0x222   :  { %v184_v9 = vmul.f32 0.044715, %v182_v7 }
 0x223   :  { %v187_v10 = vadd.f32 %v185_v8, %v177_v1 }
 0x224   :  { %v186_v11 = vadd.f32 %v184_v9, %v172_v3 }
 0x225   :  { %v189_v12 = vmul.f32 0.7978846, %v187_v10 }
 0x226   :  { %v188_v13 = vmul.f32 0.7978846, %v186_v11 }
 0x227   :  { %440 = vtanh.f32 %v189_v12 }
 0x228   :  { %442 = vtanh.f32 %v188_v13 }
 0x231   :  { %v441_v14 = vpop.eup %440 }
 0x232   :  { %v443_v15 = vpop.eup %442  ;;  %v193_v16 = vadd.f32 1.0, %v441_v14 }
 0x233   :  { %v192_v17 = vadd.f32 1.0, %v443_v15 }
 0x234   :  { %v195_v18 = vmul.f32 0.5, %v193_v16 }
 0x235   :  { %v194_v19 = vmul.f32 0.5, %v192_v17 }
 0x236   :  { %v197_v21 = vmul.f32 %v195_v18, %v177_v1 }
 0x237   :  { %v196_v20 = vmul.f32 %v194_v19, %v172_v3 }
 0x239   :  { %392 = vmatprep.mubr.f32.mxu1 %v196_v20 }
 0x23a   :  { %393 = vmatmul.mubr.f32.vlgmr.msra.gmra.mrb[0].mxu1 %v197_v21 }
 0x30d   :  { %v394_v24 = vpop.f32.mrb[0].mxu1 }
 0x30e   :  { %v292_v25 = vadd.f32 %v394_v24, %v199_v22  ;;  %v282_v26 = vpop.f32.mrb[1].mxu1 }
 0x30f   :  { %v291_v27 = vadd.f32 %v282_v26, %v198_v23 }
 0x310   :  { %294 = vst.msk [vmem:[#allocation3 + $0x8] sm:$0xff] %vm37_vm0, %v292_v25 }
 0x311   :  { %293 = vst.msk [vmem:[#allocation3] sm:$0xff] %vm37_vm0, %v291_v27 }
 0x317   :  { %v299_v29 = vld [vmem:[#allocation3 + $0x8] sm:$0xff] }
 0x318   :  { %v308_v31 = vadd.f32 %v324_v28, %v299_v29  ;;  %v298_v32 = vld [vmem:[#allocation3] sm:$0xff] }
 0x319   :  { %v307_v34 = vadd.f32 %v324_v28, %v298_v32 }
 0x31a   :  { %v312_v35 = vadd.f32 %v310_v30, %v308_v31 }
 0x31b   :  { %v311_v36 = vadd.f32 %v309_v33, %v307_v34 }
 0x31c   :  { %314 = vst.msk [vmem:[%s602_s8 + $0x8] sm:$0xff] %vm37_vm0, %v312_v35 }
 0x31d   :  { %313 = vst.msk [vmem:[%s602_s8] sm:$0xff] %vm37_vm0, %v311_v36 }

// kernel: temporal_encoder_forward.13
= control target key start
LH: loop header
LB: loop body
LE: loop exit
PB: predicated region body
PF: predicated region fallthrough
CT: control target
= control target key end

     0   :  { %s2716_s29 = smov 0   ;;  %s2993_s0 = inlined_call_operand.vmem [shape: f32[2,8,32], index: 0, kind: input, shape index: {}]   ;;  %s2994_s1 = inlined_call_operand.vmem [shape: f32[2,8,32], index: 1, kind: input, shape index: {}]   ;;  %s2995_s2 = inlined_call_operand.vmem [shape: f32[1,32], index: 2, kind: input, shape index: {}]   ;;  %s2996_s3 = inlined_call_operand.vmem [shape: f32[1,32], index: 3, kind: input, shape index: {}]   ;;  %s2997_s4 = inlined_call_operand.vmem [shape: f32[1,32], index: 4, kind: input, shape index: {}]   ;;  %s2998_s5 = inlined_call_operand.vmem [shape: f32[1,32], index: 5, kind: input, shape index: {}]   ;;  %s2999_s6 = inlined_call_operand.vmem [shape: f32[32,32], index: 6, kind: input, shape index: {}]   ;;  %s3000_s7 = inlined_call_operand.vmem [shape: f32[1,32], index: 7, kind: input, shape index: {}]   ;;  %s3001_s8 = inlined_call_operand.vmem [shape: f32[32,32], index: 8, kind: input, shape index: {}]   ;;  %s3002_s9 = inlined_call_operand.vmem [shape: f32[1,32], index: 9, kind: input, shape index: {}]   ;;  %s3003_s10 = inlined_call_operand.vmem [shape: f32[32,32], index: 10, kind: input, shape index: {}]   ;;  %s3004_s11 = inlined_call_operand.vmem [shape: f32[1,32], index: 11, kind: input, shape index: {}]   ;;  %s3005_s12 = inlined_call_operand.vmem [shape: f32[32,32], index: 12, kind: input, shape index: {}]   ;;  %s3006_s13 = inlined_call_operand.vmem [shape: f32[1,32], index: 13, kind: input, shape index: {}]   ;;  %s3007_s14 = inlined_call_operand.vmem [shape: f32[2,8,32], index: 14, kind: output, shape index: {}]  }
   0x1 LB: > { %s2309_s30 = sadd.s32 4294967295, %s2622_s29   ;;  %p2313_p0 = scmp.ge.s32.totalorder %s2622_s29, 1  ;;  %s2622_s29 = sphi %s2716_s29, %s24_s29  }
   0x2   : > { %p420_p1 = scmp.lt.s32.totalorder %s2622_s29, 3 }
   0x4   : > { %p421_p2 = pnand %p2313_p0, %p420_p1 }
   0x5   : > { %p468_p3 = scmp.lt.s32.totalorder (!%p421_p2), %s2309_s30, 1  ;;  %vm484_vm0 = vcmask (!%p421_p2), 261120   ;;  %v626_v14 = vld [vmem:[%s3001_s8] sm:$0xff] (!%p421_p2)  ;;  %v627_v15 = vld [vmem:[%s3001_s8 + $0x8] sm:$0xff] (!%p421_p2)  ;;  %v2624_v17 = vmov (!%p421_p2), 0.0|0.0   ;;  %v628_v20 = vld [vmem:[%s3001_s8 + $0x10] sm:$0xff] (!%p421_p2) }
   0x6   : > { %424 = sbr.rel (%p421_p2) target bundleno = 2246 (0x8c6), region = 76  ;;  %v542_v16 = vld [vmem:[%s2999_s6] sm:$0xff] (!%p421_p2)  ;;  %2537 = vmatprep.subr.bf16.mxu1 (!%p421_p2), %v2624_v17  ;;  %v2538_v18 = vpack.c.bf16 (!%p421_p2), %v627_v15, %v626_v14  ;;  %2531 = vmatprep.subr.bf16.mxu0 (!%p421_p2), %v2624_v17  ;;  %v543_v19 = vld [vmem:[%s2999_s6 + $0x8] sm:$0xff] (!%p421_p2)  ;;  %v629_v21 = vld [vmem:[%s3001_s8 + $0x18] sm:$0xff] (!%p421_p2)  ;;  %vm2625_vm1 = vmmov (!%p421_p2), 0   ;;  %v2626_v23 = vmov (!%p421_p2), 0.0  }
   0x7   : > { %v2532_v22 = vpack.c.bf16 (!%p421_p2), %v543_v19, %v542_v16  ;;  %2426 = vmatprep.mubr.msk.f32.mxu1 (!%p421_p2), %vm2625_vm1, %v2626_v23  ;;  %v544_v24 = vld [vmem:[%s2999_s6 + $0x10] sm:$0xff] (!%p421_p2)  ;;  %v545_v25 = vld [vmem:[%s2999_s6 + $0x18] sm:$0xff] (!%p421_p2)  ;;  %2415 = vmatprep.mubr.msk.f32.mxu0 (!%p421_p2), %vm2625_vm1, %v2626_v23  ;;  %v2541_v26 = vpack.c.bf16 (!%p421_p2), %v629_v21, %v628_v20  ;;  %v2317_v35 = vld [vmem:[%s2995_s2] ss:$0 sm:$0xff] (!%p421_p2)  ;;  %vm791_vm2 = vcmask (!%p421_p2), 31744   ;;  %s2627_s16 = smov (!%p421_p2), 124  }
   0x8   : > { %2539 = vmatpush3.bf16.msra.mxu1 (!%p421_p2), %v2538_v18  ;;  %v2535_v27 = vpack.c.bf16 (!%p421_p2), %v545_v25, %v544_v24  ;;  %v2318_v37 = vld [vmem:[%s2996_s3] ss:$0 sm:$0xff] (!%p421_p2)  ;;  %v711_v44 = vld [vmem:[%s3003_s10 + $0x8] sm:$0xff] (!%p421_p2)  ;;  %v712_v49 = vld [vmem:[%s3003_s10 + $0x10] sm:$0xff] (!%p421_p2)  ;;  %s2628_s19 = smov (!%p421_p2), 120   ;;  %vm869_vm3 = vcmask (!%p421_p2), 64512  }
   0x9   : > { %2533 = vmatpush3.bf16.msra.mxu0 (!%p421_p2), %v2532_v22  ;;  %2540 = vmatprep.subr.bf16.mxu1 (!%p421_p2), %v2624_v17  ;;  %v2319_v40 = vld [vmem:[%s2997_s4] ss:$0 sm:$0xff] (!%p421_p2)  ;;  %v713_v50 = vld [vmem:[%s3003_s10 + $0x18] sm:$0xff] (!%p421_p2)  ;;  %s2629_s20 = smov (!%p421_p2), 116   ;;  %s2631_s22 = smov (!%p421_p2), 108   ;;  %vm2147_vm4 = vcmask (!%p421_p2), 97280  }
   0xa   : > { %2534 = vmatprep.subr.bf16.mxu0 (!%p421_p2), %v2624_v17  ;;  %v710_v43 = vld [vmem:[%s3003_s10] sm:$0xff] (!%p421_p2)  ;;  %v2547_v51 = vpack.c.bf16 (!%p421_p2), %v713_v50, %v712_v49  ;;  %s2632_s23 = smov (!%p421_p2), 104   ;;  %s2633_s24 = smov (!%p421_p2), 100   ;;  %vm2149_vm5 = vcmask (!%p421_p2), 130048   ;;  %vm2151_vm6 = vcmask (!%p421_p2), 162816   ;;  %vm2153_vm7 = vcmask (!%p421_p2), 195584  }
   0xb   : > { %v2320_v45 = vld [vmem:[%s2998_s5] ss:$0 sm:$0xff] (!%p421_p2)  ;;  %v2544_v47 = vpack.c.bf16 (!%p421_p2), %v711_v44, %v710_v43  ;;  %s2634_s25 = smov (!%p421_p2), 4   ;;  %vm2155_vm8 = vcmask (!%p421_p2), 228352  }
   0xc   : > { %2542 = vmatpush3.bf16.msra.mxu1 (!%p421_p2), %v2541_v26  ;;  %v2323_v52 = vld [vmem:[%s3002_s9] ss:$0 sm:$0xff] (!%p421_p2) }
   0xd   : > { %s3009_s30 = smov (!%p468_p3, %s2309_s30), 1  ;;  %2536 = vmatpush3.bf16.msra.mxu0 %v2535_v27  ;;  %2440 = vmatprep.subr.mxu1 %v2626_v23  ;;  %v2321_v56 = vld [vmem:[%s3000_s7] ss:$0 sm:$0xff] }
   0xe   : > { %s2724_s15 = sshll.u32 %s3009_s30, 3  ;;  %2543 = vmatprep.subr.bf16.mxu0 %v2624_v17  ;;  %v2325_v60 = vld [vmem:[%s3004_s11] ss:$0 sm:$0xff] }
   0xf   : > { %s471_s18 = scalar_lea.vmem %s2993_s0, %s2724_s15  ;;  %s475_s21 = scalar_lea.vmem %s2994_s1, %s2724_s15 }
  0x10   : > { %v480_v0 = vld [vmem:[%s471_s18] sm:$0xff] }
  0x11   : > { %v485_v1 = vsel %vm484_vm0, %v480_v0, 0.0  ;;  %v481_v2 = vld [vmem:[%s475_s21] sm:$0xff]  ;;  %s2630_s21 = smov 112  }
  0x12   : > { %486 = vadd.xlane.f32.xlu0 %v485_v1  ;;  %v515_v3 = vsel %vm484_vm0, %v481_v2, 0.0 }
  0x16   : > { %516 = vadd.xlane.f32.xlu0 %v515_v3 }
  0x9f   : > { %v487_v4 = vpop.xlane.xlu0 %486 }
  0xa0   : > { %v489_v5 = vmul.f32 0.03125, %v487_v4 }
  0xa2   : > { %v490_v6 = vsub.f32 %v480_v0, %v489_v5 }
  0xa3   : > { %v517_v7 = vpop.xlane.xlu0 %516 }
  0xa4   : > { %v518_v8 = vmul.f32 0.03125, %v517_v7  ;;  %v491_v9 = vmul.f32 %v490_v6, %v490_v6 }
  0xa6   : > { %v519_v10 = vsub.f32 %v481_v2, %v518_v8  ;;  %v492_v11 = vsel %vm484_vm0, %v491_v9, 0.0 }
  0xa7   : > { %493 = vadd.xlane.f32.xlu1 %v492_v11 }
  0xa8   : > { %v520_v12 = vmul.f32 %v519_v10, %v519_v10 }
  0xaa   : > { %v521_v13 = vsel %vm484_vm0, %v520_v12, 0.0 }
  0xab   : > { %522 = vadd.xlane.f32.xlu1 %v521_v13 }
 0x134   : > { %v494_v28 = vpop.xlane.xlu1 %493 }
 0x135   : > { %v495_v29 = vmul.f32 0.03125, %v494_v28 }
 0x137   : > { %v496_v30 = vadd.f32 1e-06, %v495_v29 }
 0x138   : > { %v523_v31 = vpop.xlane.xlu1 %522 }
 0x139   : > { %2580 = vrsqrt.f32 %v496_v30  ;;  %v524_v32 = vmul.f32 0.03125, %v523_v31 }
 0x13b   : > { %v525_v33 = vadd.f32 1e-06, %v524_v32 }
 0x13d   : > { %2582 = vrsqrt.f32 %v525_v33 }
 0x143   : > { %v2581_v34 = vpop.eup %2580 }
 0x144   : > { %v498_v36 = vmul.f32 %v2581_v34, %v490_v6 }
 0x146   : > { %v505_v38 = vmul.f32 %v2317_v35, %v498_v36 }
 0x147   : > { %v2583_v39 = vpop.eup %2582 }
 0x148   : > { %v512_v41 = vadd.f32 %v2318_v37, %v505_v38  ;;  %v527_v42 = vmul.f32 %v2583_v39, %v519_v10 }
 0x14a   : > { %2427 = vmatmul.mubr.msk.f32.vlgmr.msra.gmra.mrb[0].mxu1 %vm484_vm0, %v512_v41  ;;  %v534_v46 = vmul.f32 %v2319_v40, %v527_v42 }
 0x14b   : > { %2442 = vmatprep.mubr.msk.f32.mxu1 %vm2625_vm1, %v2626_v23 }
 0x14c   : > { %v2793_v48 = vadd.f32 %v2320_v45, %v534_v46 }
 0x14e   : > { %2416 = vmatmul.mubr.msk.f32.vlgmr.msra.gmra.mrb[0].mxu0 %vm484_vm0, %v2793_v48 }
 0x14f   : > { %2545 = vmatpush3.bf16.msra.mxu0 %v2544_v47  ;;  %2437 = vmatprep.mubr.msk.f32.mxu0 %vm2625_vm1, %v2626_v23 }
 0x150   : > { %2546 = vmatprep.subr.bf16.mxu0 %v2624_v17 }
 0x153   : > { %2548 = vmatpush3.bf16.msra.mxu0 %v2547_v51 }
 0x154   : > { %2460 = vmatprep.subr.mxu0 %v2626_v23 }
 0x156   : > { %2438 = vmatmul.mubr.msk.f32.vlgmr.msra.gmra.mrb[2].mxu0 %vm484_vm0, %v512_v41 }
 0x157   : > { %2462 = vmatprep.mubr.msk.f32.mxu0 %vm2625_vm1, %v2626_v23 }
 0x21d   : > { %v706_v53 = vpop.f32.mrb[0].mxu1 }
 0x21e   : > { %v707_v54 = vadd.f32 %v2323_v52, %v706_v53  ;;  %v2428_v55 = vpop.f32.mrb[1].mxu1 }
 0x220   : > { %2441 = vmatpush3.xpose.msk.msra.mxu1 %vm791_vm2, %v707_v54 }
 0x221   : > { %v622_v57 = vpop.f32.mrb[0].mxu0  ;;  %2445 = vmatprep.subr.mxu1 %v2626_v23 }
 0x222   : > { %v623_v58 = vadd.f32 %v2321_v56, %v622_v57  ;;  %v2417_v59 = vpop.f32.mrb[1].mxu0 }
 0x224   : > { %954 = vrot.lane.b32.xlu1 %v623_v58, %s2627_s16  ;;  %2443 = vmatmul.mubr.msk.f32.vlgmr.msra.gmra.mrb[2].mxu1 %vm791_vm2, %v623_v58 }
 0x225   : > { %2447 = vmatprep.mubr.msk.f32.mxu1 %vm2625_vm1, %v2626_v23 }
 0x228   : > { %1123 = vrot.lane.b32.xlu1 %v707_v54, %s2628_s19 }
 0x229   : > { %v787_v61 = vpop.f32.mrb[2].mxu0 }
 0x22a   : > { %v2826_v62 = vadd.f32 %v2325_v60, %v787_v61  ;;  %v2439_v63 = vpop.f32.mrb[3].mxu0 }
 0x22c   : > { %2446 = vmatpush3.msra.mxu1 %v2826_v62 }
 0x22d   : > { %2450 = vmatprep.subr.mxu1 %v2626_v23 }
 0x296   : > { %v2830_v0 = vpop.permute.xlu1 %954 }
 0x29a   : > { %v1124_v1 = vpop.permute.xlu1 %1123 }
 0x29b   : > { %2461 = vmatpush3.xpose.msk.msra.mxu0 %vm791_vm2, %v1124_v1 }
 0x29c   : > { %2470 = vmatprep.subr.mxu0 %v2626_v23 }
 0x2f7   : > { %v864_v2 = vpop.f32.mrb[2].mxu1 }
 0x2f8   : > { %v868_v3 = vmul.f32 0.5, %v864_v2  ;;  %v2444_v4 = vpop.f32.mrb[3].mxu1 }
 0x2fa   : > { %v870_v5 = vsel %vm869_vm3, %v868_v3, -inf }
 0x2fb   : > { %871 = vmax.xlane.f32.xlu0 %v870_v5 }
 0x311   : > { %956 = vrot.lane.b32.xlu0 %v707_v54, %s2627_s16 }
 0x315   : > { %1289 = vrot.lane.b32.xlu0 %v707_v54, %s2629_s20 }
 0x319   : > { %1455 = vrot.lane.b32.xlu0 %v707_v54, %s2630_s21 }
 0x31d   : > { %1621 = vrot.lane.b32.xlu0 %v707_v54, %s2631_s22 }
 0x321   : > { %1787 = vrot.lane.b32.xlu0 %v707_v54, %s2632_s23 }
 0x325   : > { %1953 = vrot.lane.b32.xlu0 %v707_v54, %s2633_s24 }
 0x388   : > { %v872_v6 = vpop.xlane.xlu0 %871 }
 0x389   : > { %v873_v7 = vsub.f32 %v868_v3, %v872_v6 }
 0x38b   : > { %v874_v8 = vmul.f32 1.442695, %v873_v7 }
 0x38c   : > { %v957_v11 = vpop.permute.xlu0 %956 }
 0x38d   : > { %2584 = vpow2.f32 %v874_v8 }
 0x390   : > { %v1290_v12 = vpop.permute.xlu0 %1289 }
 0x394   : > { %v1456_v14 = vpop.permute.xlu0 %1455 }
 0x397   : > { %v2585_v9 = vpop.eup %2584 }
 0x398   : > { %v876_v10 = vsel %vm869_vm3, %v2585_v9, 0.0  ;;  %v1622_v18 = vpop.permute.xlu0 %1621 }
 0x399   : > { %877 = vadd.xlane.f32.xlu1 %v876_v10 }
 0x39c   : > { %v1788_v22 = vpop.permute.xlu0 %1787 }
 0x3a0   : > { %v1954_v26 = vpop.permute.xlu0 %1953 }
 0x3aa   : > { %1121 = vrot.lane.b32.xlu1 %v623_v58, %s2628_s19 }
 0x3ae   : > { %1287 = vrot.lane.b32.xlu1 %v623_v58, %s2629_s20 }
 0x3b2   : > { %1453 = vrot.lane.b32.xlu1 %v623_v58, %s2630_s21 }
 0x3b6   : > { %1619 = vrot.lane.b32.xlu1 %v623_v58, %s2631_s22 }
 0x3ba   : > { %1785 = vrot.lane.b32.xlu1 %v623_v58, %s2632_s23 }
 0x3be   : > { %1951 = vrot.lane.b32.xlu1 %v623_v58, %s2633_s24 }
 0x426   : > { %v878_v13 = vpop.xlane.xlu1 %877 }
 0x427   : > { %2586 = vrcp.f32 %v878_v13 }
 0x42a   : > { %v1122_v15 = vpop.permute.xlu1 %1121 }
 0x42b   : > { %2463 = vmatmul.mubr.msk.f32.vlgmr.msra.gmra.mrb[4].mxu0 %vm791_vm2, %v1122_v15 }
 0x42c   : > { %2471 = vmatpush3.xpose.msk.msra.mxu0 %vm791_vm2, %v1290_v12  ;;  %2472 = vmatprep.mubr.msk.f32.mxu0 %vm2625_vm1, %v2626_v23 }
 0x42d   : > { %2480 = vmatprep.subr.mxu0 %v2626_v23 }
 0x42e   : > { %v1288_v16 = vpop.permute.xlu1 %1287 }
 0x42f   : > { %2473 = vmatmul.mubr.msk.f32.vlgmr.msra.gmra.mrb[6].mxu0 %vm791_vm2, %v1288_v16 }
 0x430   : > { %2481 = vmatpush3.xpose.msk.msra.mxu0 %vm791_vm2, %v1456_v14  ;;  %2482 = vmatprep.mubr.msk.f32.mxu0 %vm2625_vm1, %v2626_v23 }
 0x431   : > { %v2587_v19 = vpop.eup %2586  ;;  %2490 = vmatprep.subr.mxu0 %v2626_v23 }
 0x432   : > { %v880_v20 = vmul.f32 %v2587_v19, %v2585_v9  ;;  %v1454_v21 = vpop.permute.xlu1 %1453 }
 0x433   : > { %2483 = vmatmul.mubr.msk.f32.vlgmr.msra.gmra.mrb[8].mxu0 %vm791_vm2, %v1454_v21 }
 0x434   : > { %2491 = vmatpush3.xpose.msk.msra.mxu0 %vm791_vm2, %v1622_v18  ;;  %2448 = vmatmul.mubr.msk.f32.vlgmr.msra.gmra.mrb[4].mxu1 %vm869_vm3, %v880_v20 }
 0x435   : > { %2451 = vmatpush3.xpose.msk.msra.mxu1 %vm791_vm2, %v957_v11  ;;  %2492 = vmatprep.mubr.msk.f32.mxu0 %vm2625_vm1, %v2626_v23 }
 0x436   : > { %v1620_v24 = vpop.permute.xlu1 %1619  ;;  %2500 = vmatprep.subr.mxu0 %v2626_v23  ;;  %2452 = vmatprep.mubr.msk.f32.mxu1 %vm2625_vm1, %v2626_v23 }
 0x437   : > { %2493 = vmatmul.mubr.msk.f32.vlgmr.msra.gmra.mrb[10].mxu0 %vm791_vm2, %v1620_v24  ;;  %2455 = vmatprep.subr.mxu1 %v2626_v23 }
 0x438   : > { %2501 = vmatpush3.xpose.msk.msra.mxu0 %vm791_vm2, %v1788_v22  ;;  %2453 = vmatmul.mubr.msk.f32.vlgmr.msra.gmra.mrb[6].mxu1 %vm791_vm2, %v2830_v0 }
 0x439   : > { %2502 = vmatprep.mubr.msk.f32.mxu0 %vm2625_vm1, %v2626_v23  ;;  %2510 = vmatprep.subr.mxu0 %v2626_v23 }
 0x43a   : > { %v1786_v25 = vpop.permute.xlu1 %1785  ;;  %2457 = vmatprep.mubr.msk.f32.mxu1 %vm2625_vm1, %v2626_v23 }
 0x43b   : > { %2503 = vmatmul.mubr.msk.f32.vlgmr.msra.gmra.mrb[12].mxu0 %vm791_vm2, %v1786_v25 }
 0x43c   : > { %2511 = vmatpush3.xpose.msk.msra.mxu0 %vm791_vm2, %v1954_v26  ;;  %2512 = vmatprep.mubr.msk.f32.mxu0 %vm2625_vm1, %v2626_v23 }
 0x43d   : > { %2549 = vmatprep.subr.bf16.mxu0 %v2624_v17 }
 0x43e   : > { %v1952_v27 = vpop.permute.xlu1 %1951 }
 0x43f   : > { %2513 = vmatmul.mubr.msk.f32.vlgmr.msra.gmra.mrb[14].mxu0 %vm791_vm2, %v1952_v27 }
 0x440   : > { %2528 = vmatprep.mubr.msk.f32.mxu0 %vm2625_vm1, %v2626_v23 }
 0x4fe   : > { %v1195_v28 = vpop.f32.mrb[4].mxu0 }
 0x4ff   : > { %v1199_v29 = vmul.f32 0.5, %v1195_v28  ;;  %v2464_v30 = vpop.f32.mrb[5].mxu0 }
 0x501   : > { %v1200_v31 = vsel %vm869_vm3, %v1199_v29, -inf }
 0x502   : > { %1201 = vmax.xlane.f32.xlu1 %v1200_v31  ;;  %v1361_v32 = vpop.f32.mrb[6].mxu0 }
 0x503   : > { %v2474_v33 = vpop.f32.mrb[7].mxu0  ;;  %v1365_v43 = vmul.f32 0.5, %v1361_v32 }
 0x505   : > { %v1366_v52 = vsel %vm869_vm3, %v1365_v43, -inf }
 0x506   : > { %v1527_v34 = vpop.f32.mrb[8].mxu0 }
 0x507   : > { %v2886_v35 = vpop.f32.mrb[4].mxu1  ;;  %v2484_v36 = vpop.f32.mrb[9].mxu0  ;;  %v1531_v50 = vmul.f32 0.5, %v1527_v34 }
 0x508   : > { %v2449_v37 = vpop.f32.mrb[5].mxu1 }
 0x509   : > { %v1532_v55 = vsel %vm869_vm3, %v1531_v50, -inf }
 0x50a   : > { %v1693_v38 = vpop.f32.mrb[10].mxu0 }
 0x50b   : > { %v1028_v39 = vpop.f32.mrb[6].mxu1  ;;  %v2494_v40 = vpop.f32.mrb[11].mxu0  ;;  %v1697_v54 = vmul.f32 0.5, %v1693_v38 }
 0x50c   : > { %v2888_v41 = vmul.f32 0.5, %v1028_v39  ;;  %v2454_v42 = vpop.f32.mrb[7].mxu1 }
 0x50d   : > { %v1698_v57 = vsel %vm869_vm3, %v1697_v54, -inf }
 0x50e   : > { %v1859_v44 = vpop.f32.mrb[12].mxu0  ;;  %v1033_v45 = vsel %vm869_vm3, %v2888_v41, -inf }
 0x50f   : > { %v1863_v46 = vmul.f32 0.5, %v1859_v44  ;;  %1034 = vmax.xlane.f32.xlu0 %v1033_v45  ;;  %v2504_v47 = vpop.f32.mrb[13].mxu0 }
 0x511   : > { %v1864_v49 = vsel %vm869_vm3, %v1863_v46, -inf }
 0x512   : > { %1865 = vmax.xlane.f32.xlu1 %v1864_v49  ;;  %v2025_v51 = vpop.f32.mrb[14].mxu0 }
 0x513   : > { %1367 = vmax.xlane.f32.xlu0 %v1366_v52  ;;  %v2514_v53 = vpop.f32.mrb[15].mxu0  ;;  %v2029_v56 = vmul.f32 0.5, %v2025_v51 }
 0x515   : > { %v2030_v58 = vsel %vm869_vm3, %v2029_v56, -inf }
 0x517   : > { %1533 = vmax.xlane.f32.xlu0 %v1532_v55 }
 0x51b   : > { %1699 = vmax.xlane.f32.xlu0 %v1698_v57 }
 0x51f   : > { %2031 = vmax.xlane.f32.xlu0 %v2030_v58 }
 0x58f   : > { %v1202_v59 = vpop.xlane.xlu1 %1201 }
 0x590   : > { %v1203_v60 = vsub.f32 %v1199_v29, %v1202_v59 }
 0x592   : > { %v1204_v61 = vmul.f32 1.442695, %v1203_v60 }
 0x594   : > { %2588 = vpow2.f32 %v1204_v61 }
 0x59c   : > { %v1035_v63 = vpop.xlane.xlu0 %1034 }
 0x59d   : > { %v1036_v29 = vsub.f32 %v2888_v41, %v1035_v63 }
 0x59e   : > { %v2897_v0 = vpop.eup %2588 }
 0x59f   : > { %v1206_v1 = vsel %vm869_vm3, %v2897_v0, 0.0  ;;  %v1866_v2 = vpop.xlane.xlu1 %1865  ;;  %v1037_v30 = vmul.f32 1.442695, %v1036_v29 }
 0x5a0   : > { %v1368_v3 = vpop.xlane.xlu0 %1367  ;;  %1207 = vadd.xlane.f32.xlu0 %v1206_v1  ;;  %v1867_v5 = vsub.f32 %v1863_v46, %v1866_v2  ;;  %v2157_v2 = vld [vmem:[%s3005_s12] sm:$0xff] }
 0x5a1   : > { %v1369_v4 = vsub.f32 %v1365_v43, %v1368_v3  ;;  %v2158_v3 = vld [vmem:[%s3005_s12 + $0x8] sm:$0xff] }
 0x5a2   : > { %v1868_v9 = vmul.f32 1.442695, %v1867_v5 }
 0x5a3   : > { %v1370_v6 = vmul.f32 1.442695, %v1369_v4  ;;  %v2550_v4 = vpack.c.bf16 %v2158_v3, %v2157_v2 }
 0x5a4   : > { %v1534_v7 = vpop.xlane.xlu0 %1533 }
 0x5a5   : > { %2590 = vpow2.f32 %v1370_v6  ;;  %v1535_v8 = vsub.f32 %v1531_v50, %v1534_v7  ;;  %2551 = vmatpush3.bf16.msra.mxu0 %v2550_v4  ;;  %v2159_v6 = vld [vmem:[%s3005_s12 + $0x10] sm:$0xff]  ;;  %v2160_v7 = vld [vmem:[%s3005_s12 + $0x18] sm:$0xff] }
 0x5a6   : > { %2552 = vmatprep.subr.bf16.mxu0 %v2624_v17 }
 0x5a7   : > { %v1536_v10 = vmul.f32 1.442695, %v1535_v8 }
 0x5a8   : > { %v1700_v11 = vpop.xlane.xlu0 %1699 }
 0x5a9   : > { %2592 = vpow2.f32 %v1536_v10  ;;  %v1701_v12 = vsub.f32 %v1697_v54, %v1700_v11 }
 0x5aa   : > { %2594 = vpow2.f32 %v1868_v9  ;;  %v2553_v9 = vpack.c.bf16 %v2160_v7, %v2159_v6 }
 0x5ab   : > { %v1702_v13 = vmul.f32 1.442695, %v1701_v12 }
 0x5ac   : > { %v2032_v14 = vpop.xlane.xlu0 %2031  ;;  %2554 = vmatpush3.bf16.msra.mxu0 %v2553_v9 }
 0x5ad   : > { %2596 = vpow2.f32 %v1702_v13  ;;  %v2033_v15 = vsub.f32 %v2029_v56, %v2032_v14 }
 0x5af   : > { %v2591_v16 = vpop.eup %2590  ;;  %v2034_v18 = vmul.f32 1.442695, %v2033_v15 }
 0x5b0   : > { %v1372_v19 = vsel %vm869_vm3, %v2591_v16, 0.0 }
 0x5b1   : > { %2598 = vpow2.f32 %v2034_v18  ;;  %1373 = vadd.xlane.f32.xlu1 %v1372_v19 }
 0x5b2   : > { %2600 = vpow2.f32 %v1037_v30 }
 0x5b3   : > { %v2902_v20 = vpop.eup %2592 }
 0x5b4   : > { %v1538_v21 = vsel %vm869_vm3, %v2902_v20, 0.0  ;;  %v2906_v22 = vpop.eup %2594 }
 0x5b5   : > { %1539 = vadd.xlane.f32.xlu0 %v1538_v21  ;;  %v1870_v26 = vsel %vm869_vm3, %v2906_v22, 0.0 }
 0x5b7   : > { %v2908_v24 = vpop.eup %2596 }
 0x5b8   : > { %v1704_v25 = vsel %vm869_vm3, %v2908_v24, 0.0 }
 0x5b9   : > { %1705 = vadd.xlane.f32.xlu1 %v1704_v25  ;;  %1871 = vadd.xlane.f32.xlu0 %v1870_v26 }
 0x5bb   : > { %v2914_v27 = vpop.eup %2598 }
 0x5bc   : > { %v2036_v28 = vsel %vm869_vm3, %v2914_v27, 0.0  ;;  %v2601_v31 = vpop.eup %2600 }
 0x5bd   : > { %2037 = vadd.xlane.f32.xlu1 %v2036_v28  ;;  %v1039_v32 = vsel %vm869_vm3, %v2601_v31, 0.0 }
 0x5ce   : > { %1211 = vrot.lane.b32.xlu1 %v2826_v62, %s2628_s19 }
 0x5cf   : > { %1045 = vrot.lane.b32.xlu0 %v2826_v62, %s2627_s16  ;;  %s2635_s16 = smov 8  }
 0x5d3   : > { %1709 = vrot.lane.b32.xlu0 %v2826_v62, %s2631_s22  ;;  %s2637_s22 = smov 16  }
 0x5d7   : > { %2041 = vrot.lane.b32.xlu0 %v2826_v62, %s2633_s24  ;;  %s2639_s24 = smov 24  }
 0x5f2   : > { %1040 = vadd.xlane.f32.xlu1 %v1039_v32 }
 0x603   : > { %1377 = vrot.lane.b32.xlu1 %v2826_v62, %s2629_s20 }
 0x607   : > { %1543 = vrot.lane.b32.xlu1 %v2826_v62, %s2630_s21  ;;  %s2636_s21 = smov 12  }
 0x60b   : > { %1875 = vrot.lane.b32.xlu1 %v2826_v62, %s2632_s23  ;;  %s2638_s23 = smov 20  }
 0x62d   : > { %v1208_v33 = vpop.xlane.xlu0 %1207 }
 0x63e   : > { %v1374_v38 = vpop.xlane.xlu1 %1373 }
 0x642   : > { %v1540_v34 = vpop.xlane.xlu0 %1539 }
 0x646   : > { %v1872_v36 = vpop.xlane.xlu0 %1871  ;;  %v1706_v39 = vpop.xlane.xlu1 %1705 }
 0x64a   : > { %v1046_v37 = vpop.permute.xlu0 %1045  ;;  %v2038_v40 = vpop.xlane.xlu1 %2037 }
 0x64b   : > { %2456 = vmatpush3.msra.mxu1 %v1046_v37 }
 0x64c   : > { %2465 = vmatprep.subr.mxu1 %v2626_v23 }
 0x64e   : > { %v1212_v41 = vpop.permute.xlu1 %1211  ;;  %v1710_v54 = vpop.permute.xlu0 %1709 }
 0x652   : > { %v2042_v60 = vpop.permute.xlu0 %2041 }
 0x67f   : > { %v1041_v42 = vpop.xlane.xlu1 %1040 }
 0x680   : > { %2602 = vrcp.f32 %v1041_v42 }
 0x681   : > { %2604 = vrcp.f32 %v1208_v33 }
 0x682   : > { %2606 = vrcp.f32 %v1374_v38 }
 0x683   : > { %2608 = vrcp.f32 %v1540_v34  ;;  %v1378_v46 = vpop.permute.xlu1 %1377 }
 0x684   : > { %2610 = vrcp.f32 %v1706_v39 }
 0x685   : > { %2612 = vrcp.f32 %v1872_v36 }
 0x686   : > { %2614 = vrcp.f32 %v2038_v40 }
 0x687   : > { %v1544_v51 = vpop.permute.xlu1 %1543 }
 0x68a   : > { %v2603_v43 = vpop.eup %2602 }
 0x68b   : > { %v1043_v44 = vmul.f32 %v2603_v43, %v2601_v31  ;;  %v2605_v45 = vpop.eup %2604  ;;  %v1876_v57 = vpop.permute.xlu1 %1875 }
 0x68c   : > { %v1210_v62 = vmul.f32 %v2605_v45, %v2897_v0  ;;  %v2607_v47 = vpop.eup %2606 }
 0x68d   : > { %2458 = vmatmul.mubr.msk.f32.vlgmr.msra.gmra.mrb[8].mxu1 %vm869_vm3, %v1043_v44  ;;  %v1376_v49 = vmul.f32 %v2607_v47, %v2591_v16  ;;  %v2609_v50 = vpop.eup %2608 }
 0x68e   : > { %2466 = vmatpush3.msra.mxu1 %v1212_v41  ;;  %2467 = vmatprep.mubr.msk.f32.mxu1 %vm2625_vm1, %v2626_v23  ;;  %v1542_v52 = vmul.f32 %v2609_v50, %v2902_v20  ;;  %v2611_v53 = vpop.eup %2610 }
 0x68f   : > { %2475 = vmatprep.subr.mxu1 %v2626_v23  ;;  %v1708_v55 = vmul.f32 %v2611_v53, %v2908_v24  ;;  %v2613_v56 = vpop.eup %2612 }
 0x690   : > { %v1874_v58 = vmul.f32 %v2613_v56, %v2906_v22  ;;  %v2615_v59 = vpop.eup %2614 }
 0x691   : > { %2468 = vmatmul.mubr.msk.f32.vlgmr.msra.gmra.mrb[10].mxu1 %vm869_vm3, %v1210_v62  ;;  %v2040_v61 = vmul.f32 %v2615_v59, %v2914_v27 }
 0x692   : > { %2476 = vmatpush3.msra.mxu1 %v1378_v46  ;;  %2477 = vmatprep.mubr.msk.f32.mxu1 %vm2625_vm1, %v2626_v23 }
 0x693   : > { %2485 = vmatprep.subr.mxu1 %v2626_v23 }
 0x695   : > { %2478 = vmatmul.mubr.msk.f32.vlgmr.msra.gmra.mrb[12].mxu1 %vm869_vm3, %v1376_v49 }
 0x696   : > { %2486 = vmatpush3.msra.mxu1 %v1544_v51  ;;  %2487 = vmatprep.mubr.msk.f32.mxu1 %vm2625_vm1, %v2626_v23 }
 0x697   : > { %2495 = vmatprep.subr.mxu1 %v2626_v23 }
 0x699   : > { %2488 = vmatmul.mubr.msk.f32.vlgmr.msra.gmra.mrb[14].mxu1 %vm869_vm3, %v1542_v52 }
 0x69a   : > { %2496 = vmatpush3.msra.mxu1 %v1710_v54  ;;  %2497 = vmatprep.mubr.msk.f32.mxu1 %vm2625_vm1, %v2626_v23 }
 0x69b   : > { %2505 = vmatprep.subr.mxu1 %v2626_v23 }
 0x69d   : > { %2498 = vmatmul.mubr.msk.f32.vlgmr.msra.gmra.mrb[16].mxu1 %vm869_vm3, %v1708_v55 }
 0x69e   : > { %2506 = vmatpush3.msra.mxu1 %v1876_v57  ;;  %2507 = vmatprep.mubr.msk.f32.mxu1 %vm2625_vm1, %v2626_v23 }
 0x69f   : > { %2515 = vmatprep.subr.mxu1 %v2626_v23 }
 0x6a1   : > { %2508 = vmatmul.mubr.msk.f32.vlgmr.msra.gmra.mrb[18].mxu1 %vm869_vm3, %v1874_v58 }
 0x6a2   : > { %2516 = vmatpush3.msra.mxu1 %v2042_v60  ;;  %2517 = vmatprep.mubr.msk.f32.mxu1 %vm2625_vm1, %v2626_v23 }
 0x6a5   : > { %2518 = vmatmul.mubr.msk.f32.vlgmr.msra.gmra.mrb[20].mxu1 %vm869_vm3, %v2040_v61 }
 0x760   : > { %v1117_v63 = vpop.f32.mrb[8].mxu1 }
 0x761   : > { %2118 = vrot.lane.b32.xlu1 %v1117_v63, %s2634_s25  ;;  %v2459_v0 = vpop.f32.mrb[9].mxu1  ;;  %s2640_s25 = smov 28  }
 0x764   : > { %v1283_v1 = vpop.f32.mrb[10].mxu1 }
 0x765   : > { %2122 = vrot.lane.b32.xlu0 %v1283_v1, %s2635_s16  ;;  %v2469_v23 = vpop.f32.mrb[11].mxu1  ;;  %s479_s16 = scalar_lea.vmem %s3007_s14, %s2724_s15 }
 0x768   : > { %v1449_v5 = vpop.f32.mrb[12].mxu1 }
 0x769   : > { %2126 = vrot.lane.b32.xlu1 %v1449_v5, %s2636_s21  ;;  %v2479_v8 = vpop.f32.mrb[13].mxu1 }
 0x76c   : > { %v1615_v10 = vpop.f32.mrb[14].mxu1 }
 0x76d   : > { %2130 = vrot.lane.b32.xlu0 %v1615_v10, %s2637_s22  ;;  %v2489_v11 = vpop.f32.mrb[15].mxu1 }
 0x770   : > { %v1781_v12 = vpop.f32.mrb[16].mxu1 }
 0x771   : > { %2134 = vrot.lane.b32.xlu1 %v1781_v12, %s2638_s23  ;;  %v2499_v17 = vpop.f32.mrb[17].mxu1 }
 0x774   : > { %v1947_v13 = vpop.f32.mrb[18].mxu1 }
 0x775   : > { %2138 = vrot.lane.b32.xlu0 %v1947_v13, %s2639_s24  ;;  %v2509_v14 = vpop.f32.mrb[19].mxu1 }
 0x778   : > { %v2113_v15 = vpop.f32.mrb[20].mxu1 }
 0x779   : > { %2142 = vrot.lane.b32.xlu1 %v2113_v15, %s2640_s25  ;;  %v2519_v16 = vpop.f32.mrb[21].mxu1 }
 0x7d3   : > { %v2119_v18 = vpop.permute.xlu1 %2118 }
 0x7d4   : > { %v2145_v22 = vsel %vm791_vm2, %v2886_v35, %v2119_v18  ;;  %v2352_v35 = vld [vmem:[%s3006_s13] ss:$0 sm:$0xff] }
 0x7d7   : > { %v2123_v19 = vpop.permute.xlu0 %2122 }
 0x7d8   : > { %v2146_v24 = vsel %vm869_vm3, %v2145_v22, %v2123_v19 }
 0x7db   : > { %v2127_v20 = vpop.permute.xlu1 %2126 }
 0x7dc   : > { %v2148_v26 = vsel %vm2147_vm4, %v2146_v24, %v2127_v20 }
 0x7df   : > { %v2131_v21 = vpop.permute.xlu0 %2130 }
 0x7e0   : > { %v2150_v28 = vsel %vm2149_vm5, %v2148_v26, %v2131_v21 }
 0x7e3   : > { %v2135_v25 = vpop.permute.xlu1 %2134 }
 0x7e4   : > { %v2152_v29 = vsel %vm2151_vm6, %v2150_v28, %v2135_v25 }
 0x7e7   : > { %v2139_v27 = vpop.permute.xlu0 %2138 }
 0x7e8   : > { %v2154_v30 = vsel %vm2153_vm7, %v2152_v29, %v2139_v27 }
 0x7eb   : > { %v2143_v31 = vpop.permute.xlu1 %2142 }
 0x7ec   : > { %v2156_v32 = vsel %vm2155_vm8, %v2154_v30, %v2143_v31 }
 0x7ed   : > { %2529 = vmatmul.mubr.msk.f32.vlgmr.msra.gmra.mrb[16].mxu0 %vm484_vm0, %v2156_v32 }
 0x8c0   : > { %v2230_v33 = vpop.f32.mrb[16].mxu0 }
 0x8c1   : > { %v2234_v34 = vadd.f32 %v2230_v33, %v2793_v48  ;;  %v2530_v36 = vpop.f32.mrb[17].mxu0 }
 0x8c3   : > { %v2242_v37 = vadd.f32 %v2352_v35, %v2234_v34 }
 0x8c5   : > { %2243 = vst.msk [vmem:[%s479_s16] sm:$0xff] %vm484_vm0, %v2242_v37 }
 0x8c6 PF: > { %s24_s29 = sadd.s32 1, %s2622_s29  }
 0x8c7   : > { %p21_p4 = scmp.ge.s32.totalorder %s24_s29, 4  }
 0x8c9   :  { %23 = sbr.rel (!%p21_p4) target bundleno = 1 (0x1), region = 109 }

</bundles_post_ra>
